<compile_context>
chip_gen: v5e
topology: v5e:2x2
jax: 0.10.0
libtpu: 0.0.40
codegen_flags: <defaults>
</compile_context>

<pallas_src>
import functools
import numpy as np
import jax
import jax.numpy as jnp
from jax.experimental import pallas as pl
from jax.experimental.pallas import tpu as pltpu

# Small synthetic shapes
B, F_MELS, D, T = 2, 16, 32, 64
DILATIONS = (1, 3, 9, 27, 1, 3, 9, 27, 3, 3)       # the 10 CausalBasicBlocks, k=3
UNIQUE_DILATIONS = (1, 3, 9, 27)
NUM_BLOCKS = len(DILATIONS)


def audio_enc_kernel(dil_ref,                       # scalar-prefetch: (10,) int32 in SMEM
                     x_ref, w1_ref, b1_ref, w2_ref, b2_ref, w3_ref, b3_ref,
                     wh_ref, bh_ref,                # wh_ref: (1, 3d, 2d) bf16 (streamed)
                     out_ref,                       # (T, d) f32 -- doubles as h state
                     taps_ref,                      # VMEM scratch (T, 3d) bf16
                     *, seq_len):
    d = w1_ref.shape[1]
    j = pl.program_id(1)                            # highway-block index (0..9)

    # ---- front stack: 3 k=1 causal convs (== channel matmuls), only at block 0 ----
    @pl.when(j == 0)
    def _():
        x = x_ref[...].astype(jnp.bfloat16)
        h0 = jnp.dot(x, w1_ref[...], preferred_element_type=jnp.float32) + b1_ref[...]
        h0 = jnp.maximum(h0, 0.0)                                        # relu
        h0 = jnp.dot(h0.astype(jnp.bfloat16), w2_ref[...],
                     preferred_element_type=jnp.float32) + b2_ref[...]
        h0 = jnp.maximum(h0, 0.0)                                        # relu
        h0 = jnp.dot(h0.astype(jnp.bfloat16), w3_ref[...],
                     preferred_element_type=jnp.float32) + b3_ref[...]   # linear
        out_ref[...] = h0

    # ---- highway block j (k=3 causal conv, dilation from SMEM) ----
    h = out_ref[...]                                # (T, d) f32 running state
    delta = dil_ref[j]
    row = jax.lax.broadcasted_iota(jnp.int32, (seq_len, 1), 0)

    def causal_shift(v, s):
        # v[t] <- v[t - s]; zeros where the shift would cross the sequence start.
        # One sequence per tile, so roll never leaks data across batch boundaries.
        rolled = pltpu.roll(v, shift=s, axis=0)
        return jnp.where(row >= s, rolled, jnp.zeros_like(rolled))

    # Select the (static) dilation for this block; tap order matches the weight
    # reshape: [x(t-2*delta), x(t-delta), x(t)].
    for dval in UNIQUE_DILATIONS:
        @pl.when(delta == dval)
        def _(dval=dval):
            taps = jnp.concatenate(
                [causal_shift(h, 2 * dval), causal_shift(h, dval), h], axis=-1)
            taps_ref[...] = taps.astype(jnp.bfloat16)

    # Fused K=3d matmul for all 3 taps of the d -> 2d conv.
    L = jnp.dot(taps_ref[...], wh_ref[0],
                preferred_element_type=jnp.float32) + bh_ref[0]
    g = jax.nn.sigmoid(L[:, :d])                    # EUP
    out_ref[...] = h + g * (L[:, d:] - h)           # == g*H2 + (1-g)*h, one less mul


def audio_enc_pallas(x_btf, params):
    """x_btf: (B, T, f) float32.  Returns (B, T, d) float32."""
    w1, b1, w2, b2, w3, b3, wh, bh = params
    b, t, f = x_btf.shape
    d = w1.shape[1]
    assert t % 8 == 0 and t > 2 * max(DILATIONS), "tile must hold one full sequence"

    x_flat = x_btf.reshape(b * t, f)                # sequence s = rows [s*t, (s+1)*t)

    # bf16 weights: half the DMA bytes, native MXU operand dtype.
    w1b = w1.astype(jnp.bfloat16)
    w2b = w2.astype(jnp.bfloat16)
    w3b = w3.astype(jnp.bfloat16)
    # Fuse the 3 taps: (10, 3, d, 2d) -> (10, 3d, 2d), tap slowest-varying.
    whf = wh.reshape(NUM_BLOCKS, 3 * d, 2 * d).astype(jnp.bfloat16)
    dil = jnp.asarray(DILATIONS, dtype=jnp.int32)   # scalar-prefetch (SMEM)

    def const_spec(shape):
        n = len(shape)
        return pl.BlockSpec(shape, lambda bb, jj, dref, n=n: (0,) * n)

    kernel = functools.partial(audio_enc_kernel, seq_len=t)

    out = pl.pallas_call(
        kernel,
        out_shape=jax.ShapeDtypeStruct((b * t, d), jnp.float32),
        grid_spec=pltpu.PrefetchScalarGridSpec(
            num_scalar_prefetch=1,
            grid=(b, NUM_BLOCKS),                   # (sequence, highway block)
            in_specs=[
                # activations: one sequence per tile, index independent of block axis
                pl.BlockSpec((t, f), lambda bb, jj, dref: (bb, 0)),
                # front-conv weights/biases: constant block index -> stay resident
                const_spec(w1b.shape), const_spec(b1.shape),
                const_spec(w2b.shape), const_spec(b2.shape),
                const_spec(w3b.shape), const_spec(b3.shape),
                # highway weights/biases: streamed along the block axis
                pl.BlockSpec((1, 3 * d, 2 * d), lambda bb, jj, dref: (jj, 0, 0)),
                pl.BlockSpec((1, 1, 2 * d), lambda bb, jj, dref: (jj, 0, 0)),
            ],
            # Output block index constant across the block axis: it is the
            # resident accumulator holding h; written back to HBM once per sequence.
            out_specs=pl.BlockSpec((t, d), lambda bb, jj, dref: (bb, 0)),
            scratch_shapes=[pltpu.VMEM((t, 3 * d), jnp.bfloat16)],   # fused taps
        ),
        compiler_params=pltpu.CompilerParams(
            dimension_semantics=("parallel", "arbitrary"),
            vmem_limit_bytes=48 * 1024 * 1024,      # headroom for real d=256 tiles
        ),
    )(dil, x_flat, w1b, b1, w2b, b2, w3b, b3, whf, bh)

    return out.reshape(b, t, d)


def audio_enc_reference(x_btf, params):
    """Pure-JAX f32 reference (explicit HIGHEST precision) of the same forward pass."""
    w1, b1, w2, b2, w3, b3, wh, bh = params
    t = x_btf.shape[1]
    d = w1.shape[1]
    hi = jax.lax.Precision.HIGHEST

    def dot(a, w):
        return jnp.dot(a, w, precision=hi)

    def shift(a, s):
        if s == 0:
            return a
        if s >= t:
            return jnp.zeros_like(a)
        return jnp.pad(a, ((0, 0), (s, 0), (0, 0)))[:, :t]

    h = jnp.maximum(dot(x_btf, w1) + b1, 0.0)
    h = jnp.maximum(dot(h, w2) + b2, 0.0)
    h = dot(h, w3) + b3
    for i, delta in enumerate(DILATIONS):
        L = (dot(h, wh[i, 2]) + dot(shift(h, delta), wh[i, 1])
             + dot(shift(h, 2 * delta), wh[i, 0]) + bh[i])
        g = jax.nn.sigmoid(L[..., :d])
        h = g * L[..., d:] + (1.0 - g) * h
    return h


def init_params(key, f, d):
    ks = jax.random.split(key, 8)
    w1 = jax.random.normal(ks[0], (f, d), jnp.float32) / np.sqrt(f)
    b1 = 0.01 * jax.random.normal(ks[1], (1, d), jnp.float32)
    w2 = jax.random.normal(ks[2], (d, d), jnp.float32) / np.sqrt(d)
    b2 = 0.01 * jax.random.normal(ks[3], (1, d), jnp.float32)
    w3 = jax.random.normal(ks[4], (d, d), jnp.float32) / np.sqrt(d)
    b3 = 0.01 * jax.random.normal(ks[5], (1, d), jnp.float32)
    # 10 highway blocks, each: causal conv d -> 2d, k=3  (stored as (tap, C_in, C_out))
    wh = jax.random.normal(ks[6], (NUM_BLOCKS, 3, d, 2 * d), jnp.float32) / np.sqrt(3 * d)
    bh = 0.01 * jax.random.normal(ks[7], (NUM_BLOCKS, 1, 2 * d), jnp.float32)
    return (w1, b1, w2, b2, w3, b3, wh, bh)


if __name__ == "__main__":
    key = jax.random.PRNGKey(0)
    k_x, k_p = jax.random.split(key)

    # PyTorch-convention input: S = (B, n_mels, T) melspectrograms
    S = jax.random.normal(k_x, (B, F_MELS, T), jnp.float32)
    params = init_params(k_p, F_MELS, D)

    # NCW -> (B, T, C) for the kernel layout
    x_btf = jnp.transpose(S, (0, 2, 1))

    q_btd = audio_enc_pallas(x_btf, params)
    q_btd = jax.block_until_ready(q_btd)

    # back to PyTorch output convention: Q = (B, d, T)
    Q = jnp.transpose(q_btd, (0, 2, 1))
    assert Q.shape == (B, D, T)

    ref = audio_enc_reference(x_btf, params)
    # bf16 matmul operands (f32 accumulation) vs an explicit f32-HIGHEST reference.
    np.testing.assert_allclose(np.asarray(q_btd), np.asarray(ref), rtol=2e-2, atol=2e-2)

    print("KERNEL_OK")
</pallas_src>

<mosaic_0001>
module attributes {stable_mosaic.version = 11 : i64} {
  func.func @audio_enc_kernel(%arg0: i32, %arg1: i32, %arg2: memref<10xi32, #tpu.memory_space<smem>>, %arg3: memref<64x16xf32, #tpu.memory_space<vmem>>, %arg4: memref<16x32xbf16, #tpu.memory_space<vmem>>, %arg5: memref<1x32xf32, #tpu.memory_space<vmem>>, %arg6: memref<32x32xbf16, #tpu.memory_space<vmem>>, %arg7: memref<1x32xf32, #tpu.memory_space<vmem>>, %arg8: memref<32x32xbf16, #tpu.memory_space<vmem>>, %arg9: memref<1x32xf32, #tpu.memory_space<vmem>>, %arg10: memref<1x96x64xbf16, #tpu.memory_space<vmem>>, %arg11: memref<1x1x64xf32, #tpu.memory_space<vmem>>, %arg12: memref<64x32xf32, #tpu.memory_space<vmem>>, %arg13: memref<64x96xbf16, #tpu.memory_space<vmem>>) attributes {dimension_semantics = [#tpu.dimension_semantics<parallel>, #tpu.dimension_semantics<arbitrary>], iteration_bounds = array<i64: 2, 10>, scalar_prefetch = 1 : i64, scratch_operands = 1 : i64, tpu.core_type = #tpu.core_type<tc>, window_params = [{transform_indices = @transform_0, window_bounds = array<i64: 64, 16>}, {pipeline_mode = #tpu.pipeline_mode<synchronous>, transform_indices = @transform_1, window_bounds = array<i64: 16, 32>}, {pipeline_mode = #tpu.pipeline_mode<synchronous>, transform_indices = @transform_2, window_bounds = array<i64: 1, 32>}, {pipeline_mode = #tpu.pipeline_mode<synchronous>, transform_indices = @transform_3, window_bounds = array<i64: 32, 32>}, {pipeline_mode = #tpu.pipeline_mode<synchronous>, transform_indices = @transform_4, window_bounds = array<i64: 1, 32>}, {pipeline_mode = #tpu.pipeline_mode<synchronous>, transform_indices = @transform_5, window_bounds = array<i64: 32, 32>}, {pipeline_mode = #tpu.pipeline_mode<synchronous>, transform_indices = @transform_6, window_bounds = array<i64: 1, 32>}, {transform_indices = @transform_7, window_bounds = array<i64: 1, 96, 64>}, {transform_indices = @transform_8, window_bounds = array<i64: 1, 1, 64>}, {transform_indices = @transform_9, window_bounds = array<i64: 64, 32>}]} {
    %c0_i32 = arith.constant 0 : i32
    %0 = arith.cmpi eq, %arg1, %c0_i32 : i32
    %1 = arith.extui %0 : i1 to i32
    %c0_i32_0 = arith.constant 0 : i32
    %2 = arith.cmpi ne, %1, %c0_i32_0 : i32
    scf.if %2 {
      %c0_17 = arith.constant 0 : index
      %c0_18 = arith.constant 0 : index
      %38 = vector.load %arg3[%c0_17, %c0_18] : memref<64x16xf32, #tpu.memory_space<vmem>>, vector<64x16xf32>
      %39 = arith.truncf %38 : vector<64x16xf32> to vector<64x16xbf16>
      %c0_19 = arith.constant 0 : index
      %c0_20 = arith.constant 0 : index
      %40 = vector.load %arg4[%c0_19, %c0_20] : memref<16x32xbf16, #tpu.memory_space<vmem>>, vector<16x32xbf16>
      %cst_21 = arith.constant dense<0.000000e+00> : vector<64x32xf32>
      %41 = tpu.matmul %39, %40, %cst_21 {dimension_numbers = #tpu.dot_dimension_numbers<[1], [0], [0], [1], [0, 0, 1, 1], [], []>} : vector<64x16xbf16>, vector<16x32xbf16>, vector<64x32xf32> -> vector<64x32xf32>
      %c0_22 = arith.constant 0 : index
      %c0_23 = arith.constant 0 : index
      %42 = vector.load %arg5[%c0_22, %c0_23] : memref<1x32xf32, #tpu.memory_space<vmem>>, vector<1x32xf32>
      %43 = vector.broadcast %42 : vector<1x32xf32> to vector<64x32xf32>
      %44 = arith.addf %41, %43 : vector<64x32xf32>
      %cst_24 = arith.constant 0.000000e+00 : f32
      %45 = vector.broadcast %cst_24 : f32 to vector<64x32xf32>
      %46 = arith.maximumf %44, %45 : vector<64x32xf32>
      %47 = arith.truncf %46 : vector<64x32xf32> to vector<64x32xbf16>
      %c0_25 = arith.constant 0 : index
      %c0_26 = arith.constant 0 : index
      %48 = vector.load %arg6[%c0_25, %c0_26] : memref<32x32xbf16, #tpu.memory_space<vmem>>, vector<32x32xbf16>
      %cst_27 = arith.constant dense<0.000000e+00> : vector<64x32xf32>
      %49 = tpu.matmul %47, %48, %cst_27 {dimension_numbers = #tpu.dot_dimension_numbers<[1], [0], [0], [1], [0, 0, 1, 1], [], []>} : vector<64x32xbf16>, vector<32x32xbf16>, vector<64x32xf32> -> vector<64x32xf32>
      %c0_28 = arith.constant 0 : index
      %c0_29 = arith.constant 0 : index
      %50 = vector.load %arg7[%c0_28, %c0_29] : memref<1x32xf32, #tpu.memory_space<vmem>>, vector<1x32xf32>
      %51 = vector.broadcast %50 : vector<1x32xf32> to vector<64x32xf32>
      %52 = arith.addf %49, %51 : vector<64x32xf32>
      %cst_30 = arith.constant 0.000000e+00 : f32
      %53 = vector.broadcast %cst_30 : f32 to vector<64x32xf32>
      %54 = arith.maximumf %52, %53 : vector<64x32xf32>
      %55 = arith.truncf %54 : vector<64x32xf32> to vector<64x32xbf16>
      %c0_31 = arith.constant 0 : index
      %c0_32 = arith.constant 0 : index
      %56 = vector.load %arg8[%c0_31, %c0_32] : memref<32x32xbf16, #tpu.memory_space<vmem>>, vector<32x32xbf16>
      %cst_33 = arith.constant dense<0.000000e+00> : vector<64x32xf32>
      %57 = tpu.matmul %55, %56, %cst_33 {dimension_numbers = #tpu.dot_dimension_numbers<[1], [0], [0], [1], [0, 0, 1, 1], [], []>} : vector<64x32xbf16>, vector<32x32xbf16>, vector<64x32xf32> -> vector<64x32xf32>
      %c0_34 = arith.constant 0 : index
      %c0_35 = arith.constant 0 : index
      %58 = vector.load %arg9[%c0_34, %c0_35] : memref<1x32xf32, #tpu.memory_space<vmem>>, vector<1x32xf32>
      %59 = vector.broadcast %58 : vector<1x32xf32> to vector<64x32xf32>
      %60 = arith.addf %57, %59 : vector<64x32xf32>
      %c0_36 = arith.constant 0 : index
      %c0_37 = arith.constant 0 : index
      %61 = vector.load %arg12[%c0_36, %c0_37] : memref<64x32xf32, #tpu.memory_space<vmem>>, vector<64x32xf32>
      tpu.vector_store %arg12[%c0_36, %c0_37], %60 {strides = array<i32>} : memref<64x32xf32, #tpu.memory_space<vmem>>, vector<64x32xf32>,
    } else {
    }
    %c0 = arith.constant 0 : index
    %c0_1 = arith.constant 0 : index
    %3 = vector.load %arg12[%c0, %c0_1] : memref<64x32xf32, #tpu.memory_space<vmem>>, vector<64x32xf32>
    %4 = arith.index_cast %arg1 : i32 to index
    %5 = memref.load %arg2[%4] : memref<10xi32, #tpu.memory_space<smem>>
    %6 = tpu.iota {dimensions = array<i32: 0>} : vector<64x1xi32>
    %c1_i32 = arith.constant 1 : i32
    %7 = arith.cmpi eq, %5, %c1_i32 : i32
    %8 = arith.extui %7 : i1 to i32
    %c0_i32_2 = arith.constant 0 : i32
    %9 = arith.cmpi ne, %8, %c0_i32_2 : i32
    scf.if %9 {
      %c2_i32 = arith.constant 2 : i32
      %38 = tpu.dynamic_rotate %3 by %c2_i32 dim 0 : vector<64x32xf32>, i32 -> vector<64x32xf32>
      %c2_i32_17 = arith.constant 2 : i32
      %39 = vector.broadcast %c2_i32_17 : i32 to vector<64x1xi32>
      %40 = arith.cmpi sge, %6, %39 : vector<64x1xi32>
      %cst_18 = arith.constant 0.000000e+00 : f32
      %41 = vector.broadcast %cst_18 : f32 to vector<64x32xf32>
      %42 = vector.shape_cast %40 : vector<64x1xi1> to vector<64x1xi1>
      %43 = vector.broadcast %42 : vector<64x1xi1> to vector<64x32xi1>
      %44 = arith.select %43, %38, %41 : vector<64x32xi1>, vector<64x32xf32>
      %c1_i32_19 = arith.constant 1 : i32
      %45 = tpu.dynamic_rotate %3 by %c1_i32_19 dim 0 : vector<64x32xf32>, i32 -> vector<64x32xf32>
      %c1_i32_20 = arith.constant 1 : i32
      %46 = vector.broadcast %c1_i32_20 : i32 to vector<64x1xi32>
      %47 = arith.cmpi sge, %6, %46 : vector<64x1xi32>
      %cst_21 = arith.constant 0.000000e+00 : f32
      %48 = vector.broadcast %cst_21 : f32 to vector<64x32xf32>
      %49 = vector.shape_cast %47 : vector<64x1xi1> to vector<64x1xi1>
      %50 = vector.broadcast %49 : vector<64x1xi1> to vector<64x32xi1>
      %51 = arith.select %50, %45, %48 : vector<64x32xi1>, vector<64x32xf32>
      %52 = tpu.concatenate %44, %51, %3 in 1 : vector<64x32xf32>, vector<64x32xf32>, vector<64x32xf32> -> vector<64x96xf32>
      %53 = arith.truncf %52 : vector<64x96xf32> to vector<64x96xbf16>
      %c0_22 = arith.constant 0 : index
      %c0_23 = arith.constant 0 : index
      %54 = vector.load %arg13[%c0_22, %c0_23] : memref<64x96xbf16, #tpu.memory_space<vmem>>, vector<64x96xbf16>
      tpu.vector_store %arg13[%c0_22, %c0_23], %53 {strides = array<i32>} : memref<64x96xbf16, #tpu.memory_space<vmem>>, vector<64x96xbf16>,
    } else {
    }
    %c3_i32 = arith.constant 3 : i32
    %10 = arith.cmpi eq, %5, %c3_i32 : i32
    %11 = arith.extui %10 : i1 to i32
    %c0_i32_3 = arith.constant 0 : i32
    %12 = arith.cmpi ne, %11, %c0_i32_3 : i32
    scf.if %12 {
      %c6_i32 = arith.constant 6 : i32
      %38 = tpu.dynamic_rotate %3 by %c6_i32 dim 0 : vector<64x32xf32>, i32 -> vector<64x32xf32>
      %c6_i32_17 = arith.constant 6 : i32
      %39 = vector.broadcast %c6_i32_17 : i32 to vector<64x1xi32>
      %40 = arith.cmpi sge, %6, %39 : vector<64x1xi32>
      %cst_18 = arith.constant 0.000000e+00 : f32
      %41 = vector.broadcast %cst_18 : f32 to vector<64x32xf32>
      %42 = vector.shape_cast %40 : vector<64x1xi1> to vector<64x1xi1>
      %43 = vector.broadcast %42 : vector<64x1xi1> to vector<64x32xi1>
      %44 = arith.select %43, %38, %41 : vector<64x32xi1>, vector<64x32xf32>
      %c3_i32_19 = arith.constant 3 : i32
      %45 = tpu.dynamic_rotate %3 by %c3_i32_19 dim 0 : vector<64x32xf32>, i32 -> vector<64x32xf32>
      %c3_i32_20 = arith.constant 3 : i32
      %46 = vector.broadcast %c3_i32_20 : i32 to vector<64x1xi32>
      %47 = arith.cmpi sge, %6, %46 : vector<64x1xi32>
      %cst_21 = arith.constant 0.000000e+00 : f32
      %48 = vector.broadcast %cst_21 : f32 to vector<64x32xf32>
      %49 = vector.shape_cast %47 : vector<64x1xi1> to vector<64x1xi1>
      %50 = vector.broadcast %49 : vector<64x1xi1> to vector<64x32xi1>
      %51 = arith.select %50, %45, %48 : vector<64x32xi1>, vector<64x32xf32>
      %52 = tpu.concatenate %44, %51, %3 in 1 : vector<64x32xf32>, vector<64x32xf32>, vector<64x32xf32> -> vector<64x96xf32>
      %53 = arith.truncf %52 : vector<64x96xf32> to vector<64x96xbf16>
      %c0_22 = arith.constant 0 : index
      %c0_23 = arith.constant 0 : index
      %54 = vector.load %arg13[%c0_22, %c0_23] : memref<64x96xbf16, #tpu.memory_space<vmem>>, vector<64x96xbf16>
      tpu.vector_store %arg13[%c0_22, %c0_23], %53 {strides = array<i32>} : memref<64x96xbf16, #tpu.memory_space<vmem>>, vector<64x96xbf16>,
    } else {
    }
    %c9_i32 = arith.constant 9 : i32
    %13 = arith.cmpi eq, %5, %c9_i32 : i32
    %14 = arith.extui %13 : i1 to i32
    %c0_i32_4 = arith.constant 0 : i32
    %15 = arith.cmpi ne, %14, %c0_i32_4 : i32
    scf.if %15 {
      %c18_i32 = arith.constant 18 : i32
      %38 = tpu.dynamic_rotate %3 by %c18_i32 dim 0 : vector<64x32xf32>, i32 -> vector<64x32xf32>
      %c18_i32_17 = arith.constant 18 : i32
      %39 = vector.broadcast %c18_i32_17 : i32 to vector<64x1xi32>
      %40 = arith.cmpi sge, %6, %39 : vector<64x1xi32>
      %cst_18 = arith.constant 0.000000e+00 : f32
      %41 = vector.broadcast %cst_18 : f32 to vector<64x32xf32>
      %42 = vector.shape_cast %40 : vector<64x1xi1> to vector<64x1xi1>
      %43 = vector.broadcast %42 : vector<64x1xi1> to vector<64x32xi1>
      %44 = arith.select %43, %38, %41 : vector<64x32xi1>, vector<64x32xf32>
      %c9_i32_19 = arith.constant 9 : i32
      %45 = tpu.dynamic_rotate %3 by %c9_i32_19 dim 0 : vector<64x32xf32>, i32 -> vector<64x32xf32>
      %c9_i32_20 = arith.constant 9 : i32
      %46 = vector.broadcast %c9_i32_20 : i32 to vector<64x1xi32>
      %47 = arith.cmpi sge, %6, %46 : vector<64x1xi32>
      %cst_21 = arith.constant 0.000000e+00 : f32
      %48 = vector.broadcast %cst_21 : f32 to vector<64x32xf32>
      %49 = vector.shape_cast %47 : vector<64x1xi1> to vector<64x1xi1>
      %50 = vector.broadcast %49 : vector<64x1xi1> to vector<64x32xi1>
      %51 = arith.select %50, %45, %48 : vector<64x32xi1>, vector<64x32xf32>
      %52 = tpu.concatenate %44, %51, %3 in 1 : vector<64x32xf32>, vector<64x32xf32>, vector<64x32xf32> -> vector<64x96xf32>
      %53 = arith.truncf %52 : vector<64x96xf32> to vector<64x96xbf16>
      %c0_22 = arith.constant 0 : index
      %c0_23 = arith.constant 0 : index
      %54 = vector.load %arg13[%c0_22, %c0_23] : memref<64x96xbf16, #tpu.memory_space<vmem>>, vector<64x96xbf16>
      tpu.vector_store %arg13[%c0_22, %c0_23], %53 {strides = array<i32>} : memref<64x96xbf16, #tpu.memory_space<vmem>>, vector<64x96xbf16>,
    } else {
    }
    %c27_i32 = arith.constant 27 : i32
    %16 = arith.cmpi eq, %5, %c27_i32 : i32
    %17 = arith.extui %16 : i1 to i32
    %c0_i32_5 = arith.constant 0 : i32
    %18 = arith.cmpi ne, %17, %c0_i32_5 : i32
    scf.if %18 {
      %c54_i32 = arith.constant 54 : i32
      %38 = tpu.dynamic_rotate %3 by %c54_i32 dim 0 : vector<64x32xf32>, i32 -> vector<64x32xf32>
      %c54_i32_17 = arith.constant 54 : i32
      %39 = vector.broadcast %c54_i32_17 : i32 to vector<64x1xi32>
      %40 = arith.cmpi sge, %6, %39 : vector<64x1xi32>
      %cst_18 = arith.constant 0.000000e+00 : f32
      %41 = vector.broadcast %cst_18 : f32 to vector<64x32xf32>
      %42 = vector.shape_cast %40 : vector<64x1xi1> to vector<64x1xi1>
      %43 = vector.broadcast %42 : vector<64x1xi1> to vector<64x32xi1>
      %44 = arith.select %43, %38, %41 : vector<64x32xi1>, vector<64x32xf32>
      %c27_i32_19 = arith.constant 27 : i32
      %45 = tpu.dynamic_rotate %3 by %c27_i32_19 dim 0 : vector<64x32xf32>, i32 -> vector<64x32xf32>
      %c27_i32_20 = arith.constant 27 : i32
      %46 = vector.broadcast %c27_i32_20 : i32 to vector<64x1xi32>
      %47 = arith.cmpi sge, %6, %46 : vector<64x1xi32>
      %cst_21 = arith.constant 0.000000e+00 : f32
      %48 = vector.broadcast %cst_21 : f32 to vector<64x32xf32>
      %49 = vector.shape_cast %47 : vector<64x1xi1> to vector<64x1xi1>
      %50 = vector.broadcast %49 : vector<64x1xi1> to vector<64x32xi1>
      %51 = arith.select %50, %45, %48 : vector<64x32xi1>, vector<64x32xf32>
      %52 = tpu.concatenate %44, %51, %3 in 1 : vector<64x32xf32>, vector<64x32xf32>, vector<64x32xf32> -> vector<64x96xf32>
      %53 = arith.truncf %52 : vector<64x96xf32> to vector<64x96xbf16>
      %c0_22 = arith.constant 0 : index
      %c0_23 = arith.constant 0 : index
      %54 = vector.load %arg13[%c0_22, %c0_23] : memref<64x96xbf16, #tpu.memory_space<vmem>>, vector<64x96xbf16>
      tpu.vector_store %arg13[%c0_22, %c0_23], %53 {strides = array<i32>} : memref<64x96xbf16, #tpu.memory_space<vmem>>, vector<64x96xbf16>,
    } else {
    }
    %c0_6 = arith.constant 0 : index
    %c0_7 = arith.constant 0 : index
    %19 = vector.load %arg13[%c0_6, %c0_7] : memref<64x96xbf16, #tpu.memory_space<vmem>>, vector<64x96xbf16>
    %c0_8 = arith.constant 0 : index
    %c0_9 = arith.constant 0 : index
    %c0_10 = arith.constant 0 : index
    %20 = vector.load %arg10[%c0_8, %c0_9, %c0_10] : memref<1x96x64xbf16, #tpu.memory_space<vmem>>, vector<1x96x64xbf16>
    %21 = vector.shape_cast %20 : vector<1x96x64xbf16> to vector<96x64xbf16>
    %cst = arith.constant dense<0.000000e+00> : vector<64x64xf32>
    %22 = tpu.matmul %19, %21, %cst {dimension_numbers = #tpu.dot_dimension_numbers<[1], [0], [0], [1], [0, 0, 1, 1], [], []>} : vector<64x96xbf16>, vector<96x64xbf16>, vector<64x64xf32> -> vector<64x64xf32>
    %c0_11 = arith.constant 0 : index
    %c0_12 = arith.constant 0 : index
    %c0_13 = arith.constant 0 : index
    %23 = vector.load %arg11[%c0_11, %c0_12, %c0_13] : memref<1x1x64xf32, #tpu.memory_space<vmem>>, vector<1x1x64xf32>
    %24 = vector.shape_cast %23 : vector<1x1x64xf32> to vector<1x64xf32>
    %25 = vector.broadcast %24 : vector<1x64xf32> to vector<64x64xf32>
    %26 = arith.addf %22, %25 : vector<64x64xf32>
    %27 = vector.extract_strided_slice %26 {offsets = [0, 0], sizes = [64, 32], strides = [1, 1]} : vector<64x64xf32> to vector<64x32xf32>
    %28 = arith.negf %27 : vector<64x32xf32>
    %29 = math.exp %28 : vector<64x32xf32>
    %cst_14 = arith.constant 1.000000e+00 : f32
    %30 = vector.broadcast %cst_14 : f32 to vector<64x32xf32>
    %31 = arith.addf %30, %29 : vector<64x32xf32>
    %32 = arith.divf %30, %31 : vector<64x32xf32>
    %33 = vector.extract_strided_slice %26 {offsets = [0, 32], sizes = [64, 32], strides = [1, 1]} : vector<64x64xf32> to vector<64x32xf32>
    %34 = arith.subf %33, %3 : vector<64x32xf32>
    %35 = arith.mulf %32, %34 : vector<64x32xf32>
    %36 = arith.addf %3, %35 : vector<64x32xf32>
    %c0_15 = arith.constant 0 : index
    %c0_16 = arith.constant 0 : index
    %37 = vector.load %arg12[%c0_15, %c0_16] : memref<64x32xf32, #tpu.memory_space<vmem>>, vector<64x32xf32>
    tpu.vector_store %arg12[%c0_15, %c0_16], %36 {strides = array<i32>} : memref<64x32xf32, #tpu.memory_space<vmem>>, vector<64x32xf32>,
    return
  }
  func.func @transform_0(%arg0: i32, %arg1: i32, %arg2: memref<10xi32, #tpu.memory_space<smem>>) -> (i32, i32) {
    %c0_i32 = arith.constant 0 : i32
    %c0_i32_0 = arith.constant 0 : i32
    return %arg0, %c0_i32 : i32, i32
  }
  func.func @transform_1(%arg0: i32, %arg1: i32, %arg2: memref<10xi32, #tpu.memory_space<smem>>) -> (i32, i32) {
    %c0_i32 = arith.constant 0 : i32
    %c0_i32_0 = arith.constant 0 : i32
    %c0_i32_1 = arith.constant 0 : i32
    return %c0_i32, %c0_i32_0 : i32, i32
  }
  func.func @transform_2(%arg0: i32, %arg1: i32, %arg2: memref<10xi32, #tpu.memory_space<smem>>) -> (i32, i32) {
    %c0_i32 = arith.constant 0 : i32
    %c0_i32_0 = arith.constant 0 : i32
    %c0_i32_1 = arith.constant 0 : i32
    return %c0_i32, %c0_i32_0 : i32, i32
  }
  func.func @transform_3(%arg0: i32, %arg1: i32, %arg2: memref<10xi32, #tpu.memory_space<smem>>) -> (i32, i32) {
    %c0_i32 = arith.constant 0 : i32
    %c0_i32_0 = arith.constant 0 : i32
    %c0_i32_1 = arith.constant 0 : i32
    return %c0_i32, %c0_i32_0 : i32, i32
  }
  func.func @transform_4(%arg0: i32, %arg1: i32, %arg2: memref<10xi32, #tpu.memory_space<smem>>) -> (i32, i32) {
    %c0_i32 = arith.constant 0 : i32
    %c0_i32_0 = arith.constant 0 : i32
    %c0_i32_1 = arith.constant 0 : i32
    return %c0_i32, %c0_i32_0 : i32, i32
  }
  func.func @transform_5(%arg0: i32, %arg1: i32, %arg2: memref<10xi32, #tpu.memory_space<smem>>) -> (i32, i32) {
    %c0_i32 = arith.constant 0 : i32
    %c0_i32_0 = arith.constant 0 : i32
    %c0_i32_1 = arith.constant 0 : i32
    return %c0_i32, %c0_i32_0 : i32, i32
  }
  func.func @transform_6(%arg0: i32, %arg1: i32, %arg2: memref<10xi32, #tpu.memory_space<smem>>) -> (i32, i32) {
    %c0_i32 = arith.constant 0 : i32
    %c0_i32_0 = arith.constant 0 : i32
    %c0_i32_1 = arith.constant 0 : i32
    return %c0_i32, %c0_i32_0 : i32, i32
  }
  func.func @transform_7(%arg0: i32, %arg1: i32, %arg2: memref<10xi32, #tpu.memory_space<smem>>) -> (i32, i32, i32) {
    %c0_i32 = arith.constant 0 : i32
    %c0_i32_0 = arith.constant 0 : i32
    %c0_i32_1 = arith.constant 0 : i32
    return %arg1, %c0_i32, %c0_i32_0 : i32, i32, i32
  }
  func.func @transform_8(%arg0: i32, %arg1: i32, %arg2: memref<10xi32, #tpu.memory_space<smem>>) -> (i32, i32, i32) {
    %c0_i32 = arith.constant 0 : i32
    %c0_i32_0 = arith.constant 0 : i32
    %c0_i32_1 = arith.constant 0 : i32
    return %arg1, %c0_i32, %c0_i32_0 : i32, i32, i32
  }
  func.func @transform_9(%arg0: i32, %arg1: i32, %arg2: memref<10xi32, #tpu.memory_space<smem>>) -> (i32, i32) {
    %c0_i32 = arith.constant 0 : i32
    %c0_i32_0 = arith.constant 0 : i32
    return %arg0, %c0_i32 : i32, i32
  }
}

</mosaic_0001>

<bundles_post_ra>
// kernel: tpu_custom_call.1
= control target key start
LH: loop header
LB: loop body
LE: loop exit
PB: predicated region body
PF: predicated region fallthrough
CT: control target
= control target key end

     0   :  { %s2341_s16 = smov [#allocation4]   ;;  %s3012_s0 = inlined_call_operand.vmem [shape: s32[10], index: 0, kind: input, shape index: {}]   ;;  %s3013_s1 = inlined_call_operand.vmem [shape: f32[128,16], index: 1, kind: input, shape index: {}]   ;;  %s3014_s2 = inlined_call_operand.vmem [shape: bf16[16,32], index: 2, kind: input, shape index: {}]   ;;  %s3015_s3 = inlined_call_operand.vmem [shape: f32[1,32], index: 3, kind: input, shape index: {}]   ;;  %s3016_s4 = inlined_call_operand.vmem [shape: bf16[32,32], index: 4, kind: input, shape index: {}]   ;;  %s3017_s5 = inlined_call_operand.vmem [shape: f32[1,32], index: 5, kind: input, shape index: {}]   ;;  %s3018_s6 = inlined_call_operand.vmem [shape: bf16[32,32], index: 6, kind: input, shape index: {}]   ;;  %s3019_s7 = inlined_call_operand.vmem [shape: f32[1,32], index: 7, kind: input, shape index: {}]   ;;  %s3020_s8 = inlined_call_operand.vmem [shape: bf16[10,96,64], index: 8, kind: input, shape index: {}]   ;;  %s3021_s9 = inlined_call_operand.vmem [shape: f32[10,1,64], index: 9, kind: input, shape index: {}]   ;;  %s3022_s10 = inlined_call_operand.vmem [shape: f32[128,32], index: 10, kind: output, shape index: {}]  }
   0x1   :  { %s16_s15 = sshll.u32 %s3012_s0, 4  ;;  %s17_s15 = int_to_ptr.vmem [resolvable:$true] %s16_s15 }
   0x2   :  { %19 = dma.vmem_to_smem %s17_s15, 16, %s2341_s16, [#allocation3] }
   0x3   :  { %2319 = dma.done.wait [#allocation3], 16 }
   0x4   :  { %2320 = vsyncadd [#allocation3], 4294967280 }
   0x5   :  { %22 = sfence }
   0x6   :  { %s2412_s17 = smov 0   ;;  %s2414_s18 = smov 0  }
   0x7   :  { %s2416_s19 = smov 0   ;;  %s2418_s20 = smov 0  }
   0x8   :  { %s2420_s21 = smov 0  }
   0x9 LB: > { %s37_s0 = sadd.s32 1, %s2331_s19  ;;  %s40_s22 = sadd.s32 1, %s2335_s20  ;;  %s2339_s21 = sphi %s2420_s21, %s28_s21   ;;  %s2335_s20 = sphi %s2418_s20, %s3028_s20   ;;  %s2331_s19 = sphi %s2416_s19, %s3027_s19   ;;  %s2327_s18 = sphi %s2414_s18, %s3026_s18   ;;  %s2323_s17 = sphi %s2412_s17, %s3025_s17  }
   0xa   : > { %p38_p0 = scmp.ge.s32.totalorder %s37_s0, 10  ;;  %p1903_p1 = scmp.ge.s32.totalorder %s2339_s21, 1 }
   0xb   : > { %p327_p2 = scmp.lt.s32.totalorder %s2339_s21, 21 }
   0xc   : > { %s3030_s0 = smov (%p38_p0, %s37_s0), 0  ;;  %s3032_s22 = smov (!%p38_p0, %s40_s22), %s2335_s20 }
   0xd   : > { %p328_p3 = pnand %p1903_p1, %p327_p2  ;;  %p42_p4 = scmp.ge.s32.totalorder %s3032_s22, 2 }
   0xe   : > { %s1904_s23 = sshll.u32 (!%p328_p3), %s2327_s18, 3  ;;  %p377_p5 = scmp.lt.s32.totalorder (!%p328_p3), %s2323_s17, 9 }
   0xf   : > { %s3034_s22 = smov (%p42_p4, %s3032_s22), 0  ;;  %331 = sbr.rel (%p328_p3) target bundleno = 1417 (0x589), region = 56 }
  0x10   : > { %3023 = sst [smem:[#allocation6_spill]] %s3034_s22  ;;  %p372_p6 = scmp.lt.s32.totalorder (!%p328_p3), %s1904_s23, 15 }
  0x11   : > { %p1909_p7 = scmp.ne.s32.totalorder (!%p328_p3), %s2323_s17, 0 }
  0x14   : > { %s2446_s24 = scalar_select %p377_p5, %s2323_s17, 9 }
  0x15   : > { %s3036_s23 = smov (!%p372_p6, %s1904_s23), 15  ;;  %395 = sbr.rel (%p1909_p7) target bundleno = 507 (0x1fb), region = 60 }
  0x16   : > { %s2037_s25 = smul.u32 48, %s2446_s24  ;;  %s384_s28 = scalar_lea.vmem %s3021_s9, %s2446_s24 }
  0x17   : > { %s1905_s29 = sshll.u32 %s3036_s23, 3 }
  0x18   : > { %s375_s12 = scalar_lea.vmem %s3013_s1, %s1905_s29  ;;  %s2459_s15 = scalar_lea.vmem %s3020_s8, %s2037_s25 }
  0x19   : > { %s2464_s22 = scalar_lea.vmem %s3022_s10, %s1905_s29 }
  0x1a   : > { %v2000_v0 = vld [vmem:[%s3014_s2] sm:$0xff]  ;;  %v397_v2 = vld [vmem:[%s375_s12 + $0x8] sm:$0xff]  ;;  %vm420_vm0 = vcmask 130048   ;;  %v398_v4 = vld [vmem:[%s375_s12 + $0x10] sm:$0xff]  ;;  %vm494_vm1 = vcmask 261120  }
  0x1b   : > { %v396_v1 = vld [vmem:[%s375_s12] sm:$0xff]  ;;  %440 = vmatpush.bf16.msra.mxu0 %v2000_v0  ;;  %v399_v5 = vld [vmem:[%s375_s12 + $0x18] sm:$0xff]  ;;  %v401_v8 = vld [vmem:[%s375_s12 + $0x28] sm:$0xff] }
  0x1c   : > { %v404_v3 = vpack.c.bf16 %v397_v2, %v396_v1  ;;  %v405_v6 = vpack.c.bf16 %v399_v5, %v398_v4  ;;  %v400_v7 = vld [vmem:[%s375_s12 + $0x20] sm:$0xff]  ;;  %v402_v10 = vld [vmem:[%s375_s12 + $0x30] sm:$0xff]  ;;  %v403_v11 = vld [vmem:[%s375_s12 + $0x38] sm:$0xff] }
  0x1d   : > { %v406_v9 = vpack.c.bf16 %v401_v8, %v400_v7  ;;  %v407_v12 = vpack.c.bf16 %v403_v11, %v402_v10  ;;  %v2002_v13 = vld [vmem:[%s3016_s4 + $0x8] sm:$0xff]  ;;  %v2001_v14 = vld [vmem:[%s3016_s4] sm:$0xff] }
  0x1e   : > { %1914 = vmatmul.msk.bf16.vlgmr.msra.gmra.mxu0 %vm420_vm0, %v404_v3  ;;  %513 = vmatpush.bf16.msra.mxu1 %v2002_v13  ;;  %v2091_v16 = vld [vmem:[%s3015_s3] ss:$0 sm:$0xff]  ;;  %v2004_v44 = vld [vmem:[%s3018_s6 + $0x8] sm:$0xff] }
  0x1f   : > { %2015 = vmatpush.bf16.msra.mxu3 %v2002_v13  ;;  %2017 = vmatpush.bf16.msra.mxu2 %v2004_v44  ;;  %v2003_v45 = vld [vmem:[%s3018_s6] sm:$0xff] }
  0x20   : > { %v2092_v47 = vld [vmem:[%s3017_s5] ss:$0 sm:$0xff] }
  0x21   : > { %v2093_v11 = vld [vmem:[%s3019_s7] ss:$0 sm:$0xff] }
  0x22   : > { %514 = vmatpush.bf16.msra.mxu1 %v2001_v14 }
  0x23   : > { %2016 = vmatpush.bf16.msra.mxu3 %v2001_v14  ;;  %2018 = vmatpush.bf16.msra.mxu2 %v2003_v45 }
  0x26   : > { %586 = vmatpush.bf16.msrb.mxu1 %v2004_v44 }
  0x2a   : > { %587 = vmatpush.bf16.msrb.mxu1 %v2003_v45 }
  0x2e   : > { %1915 = vmatmul.msk.bf16.gmra.mxu0 %vm420_vm0, %v405_v6 }
  0x3e   : > { %1916 = vmatmul.msk.bf16.gmra.mxu0 %vm420_vm0, %v406_v9 }
  0x4e   : > { %1917 = vmatmul.msk.bf16.gmra.mxu0 %vm420_vm0, %v407_v12 }
  0x9b   : > { %v442_v15 = vpop.f32.mrf.mxu0 }
  0x9c   : > { %v443_v17 = vadd.f32 %v2091_v16, %v442_v15 }
  0x9e   : > { %v462_v20 = vmax.f32 %v443_v17, 0.0 }
  0xa3   : > { %v444_v18 = vpop.f32.mrf.mxu0 }
  0xa4   : > { %v445_v19 = vadd.f32 %v2091_v16, %v444_v18 }
  0xa6   : > { %v463_v21 = vmax.f32 %v445_v19, 0.0 }
  0xa8   : > { %v470_v22 = vpack.c.bf16 %v463_v21, %v462_v20 }
  0xaa   : > { %1926 = vmatmul.msk.bf16.vlgmr.msra.gmra.mxu1 %vm494_vm1, %v470_v22 }
  0xab   : > { %v447_v23 = vpop.f32.mrf.mxu0 }
  0xac   : > { %v448_v24 = vadd.f32 %v2091_v16, %v447_v23 }
  0xae   : > { %v464_v27 = vmax.f32 %v448_v24, 0.0 }
  0xb3   : > { %v449_v25 = vpop.f32.mrf.mxu0 }
  0xb4   : > { %v450_v26 = vadd.f32 %v2091_v16, %v449_v25 }
  0xb6   : > { %v465_v28 = vmax.f32 %v450_v26, 0.0 }
  0xb8   : > { %v471_v29 = vpack.c.bf16 %v465_v28, %v464_v27 }
  0xba   : > { %1927 = vmatmul.msk.bf16.vlgmr.msra.gmra.mxu3 %vm494_vm1, %v471_v29 }
  0xbb   : > { %v452_v30 = vpop.f32.mrf.mxu0 }
  0xbc   : > { %v453_v31 = vadd.f32 %v2091_v16, %v452_v30 }
  0xbe   : > { %v466_v34 = vmax.f32 %v453_v31, 0.0 }
  0xc3   : > { %v454_v32 = vpop.f32.mrf.mxu0 }
  0xc4   : > { %v455_v33 = vadd.f32 %v2091_v16, %v454_v32 }
  0xc6   : > { %v467_v35 = vmax.f32 %v455_v33, 0.0 }
  0xc8   : > { %v472_v36 = vpack.c.bf16 %v467_v35, %v466_v34 }
  0xca   : > { %1928 = vmatmul.msk.bf16.gmra.mxu3 %vm494_vm1, %v472_v36 }
  0xcb   : > { %v457_v37 = vpop.f32.mrf.mxu0 }
  0xcc   : > { %v458_v38 = vadd.f32 %v2091_v16, %v457_v37 }
  0xce   : > { %v468_v41 = vmax.f32 %v458_v38, 0.0 }
  0xd3   : > { %v459_v39 = vpop.f32.mrf.mxu0 }
  0xd4   : > { %v460_v40 = vadd.f32 %v2091_v16, %v459_v39 }
  0xd6   : > { %v469_v42 = vmax.f32 %v460_v40, 0.0 }
  0xd8   : > { %v473_v43 = vpack.c.bf16 %v469_v42, %v468_v41 }
  0xda   : > { %1929 = vmatmul.msk.bf16.gmra.mxu3 %vm494_vm1, %v473_v43 }
 0x127   : > { %v516_v46 = vpop.f32.mrf.mxu1 }
 0x128   : > { %v517_v48 = vadd.f32 %v2092_v47, %v516_v46 }
 0x12a   : > { %v536_v51 = vmax.f32 %v517_v48, 0.0 }
 0x12f   : > { %v518_v49 = vpop.f32.mrf.mxu1 }
 0x130   : > { %v519_v50 = vadd.f32 %v2092_v47, %v518_v49 }
 0x132   : > { %v537_v52 = vmax.f32 %v519_v50, 0.0 }
 0x134   : > { %v544_v53 = vpack.c.bf16 %v537_v52, %v536_v51 }
 0x136   : > { %1938 = vmatmul.msk.bf16.vlgmr.msrb.gmra.mxu1 %vm494_vm1, %v544_v53 }
 0x13d   : > { %v521_v54 = vpop.f32.mrf.mxu3 }
 0x13e   : > { %v522_v55 = vadd.f32 %v2092_v47, %v521_v54 }
 0x140   : > { %v538_v58 = vmax.f32 %v522_v55, 0.0 }
 0x145   : > { %v523_v56 = vpop.f32.mrf.mxu3 }
 0x146   : > { %v524_v57 = vadd.f32 %v2092_v47, %v523_v56 }
 0x148   : > { %v539_v59 = vmax.f32 %v524_v57, 0.0 }
 0x14a   : > { %v545_v60 = vpack.c.bf16 %v539_v59, %v538_v58 }
 0x14c   : > { %1939 = vmatmul.msk.bf16.vlgmr.msra.gmra.mxu2 %vm494_vm1, %v545_v60 }
 0x14d   : > { %v526_v61 = vpop.f32.mrf.mxu3 }
 0x14e   : > { %v527_v62 = vadd.f32 %v2092_v47, %v526_v61 }
 0x150   : > { %v540_v1 = vmax.f32 %v527_v62, 0.0 }
 0x155   : > { %v528_v63 = vpop.f32.mrf.mxu3 }
 0x156   : > { %v529_v0 = vadd.f32 %v2092_v47, %v528_v63 }
 0x158   : > { %v541_v2 = vmax.f32 %v529_v0, 0.0 }
 0x15a   : > { %v546_v3 = vpack.c.bf16 %v541_v2, %v540_v1 }
 0x15c   : > { %1940 = vmatmul.msk.bf16.gmra.mxu2 %vm494_vm1, %v546_v3 }
 0x15d   : > { %v531_v4 = vpop.f32.mrf.mxu3 }
 0x15e   : > { %v532_v5 = vadd.f32 %v2092_v47, %v531_v4 }
 0x160   : > { %v542_v8 = vmax.f32 %v532_v5, 0.0 }
 0x165   : > { %v533_v6 = vpop.f32.mrf.mxu3 }
 0x166   : > { %v534_v7 = vadd.f32 %v2092_v47, %v533_v6 }
 0x168   : > { %v543_v9 = vmax.f32 %v534_v7, 0.0 }
 0x16a   : > { %v547_v10 = vpack.c.bf16 %v543_v9, %v542_v8 }
 0x16c   : > { %1941 = vmatmul.msk.bf16.gmra.mxu2 %vm494_vm1, %v547_v10 }
 0x1b3   : > { %v589_v12 = vpop.f32.mrf.mxu1 }
 0x1b4   : > { %v590_v13 = vadd.f32 %v2093_v11, %v589_v12 }
 0x1b6   : > { %609 = vst.msk [vmem:[%s2464_s22] sm:$0xff] %vm494_vm1, %v590_v13 }
 0x1bb   : > { %v591_v14 = vpop.f32.mrf.mxu1 }
 0x1bc   : > { %v592_v15 = vadd.f32 %v2093_v11, %v591_v14 }
 0x1be   : > { %610 = vst.msk [vmem:[%s2464_s22 + $0x8] sm:$0xff] %vm494_vm1, %v592_v15 }
 0x1cf   : > { %v594_v16 = vpop.f32.mrf.mxu2 }
 0x1d0   : > { %v595_v17 = vadd.f32 %v2093_v11, %v594_v16 }
 0x1d2   : > { %611 = vst.msk [vmem:[%s2464_s22 + $0x10] sm:$0xff] %vm494_vm1, %v595_v17 }
 0x1d7   : > { %v596_v18 = vpop.f32.mrf.mxu2 }
 0x1d8   : > { %v597_v19 = vadd.f32 %v2093_v11, %v596_v18 }
 0x1da   : > { %612 = vst.msk [vmem:[%s2464_s22 + $0x18] sm:$0xff] %vm494_vm1, %v597_v19 }
 0x1df   : > { %v599_v20 = vpop.f32.mrf.mxu2 }
 0x1e0   : > { %v600_v21 = vadd.f32 %v2093_v11, %v599_v20 }
 0x1e2   : > { %613 = vst.msk [vmem:[%s2464_s22 + $0x20] sm:$0xff] %vm494_vm1, %v600_v21 }
 0x1e7   : > { %v601_v22 = vpop.f32.mrf.mxu2 }
 0x1e8   : > { %v602_v23 = vadd.f32 %v2093_v11, %v601_v22 }
 0x1ea   : > { %614 = vst.msk [vmem:[%s2464_s22 + $0x28] sm:$0xff] %vm494_vm1, %v602_v23 }
 0x1ef   : > { %v604_v24 = vpop.f32.mrf.mxu2 }
 0x1f0   : > { %v605_v25 = vadd.f32 %v2093_v11, %v604_v24 }
 0x1f2   : > { %615 = vst.msk [vmem:[%s2464_s22 + $0x30] sm:$0xff] %vm494_vm1, %v605_v25 }
 0x1f7   : > { %v606_v26 = vpop.f32.mrf.mxu2 }
 0x1f8   : > { %v607_v27 = vadd.f32 %v2093_v11, %v606_v26 }
 0x1fa   : > { %616 = vst.msk [vmem:[%s2464_s22 + $0x38] sm:$0xff] %vm494_vm1, %v607_v27 }
 0x1fb PF: > { %v2516_v28 = vld [vmem:[%s2464_s22] sm:$0xff]  ;;  %v2519_v29 = vld [vmem:[%s2464_s22 + $0x8] sm:$0xff]  ;;  %v2522_v30 = vld [vmem:[%s2464_s22 + $0x10] sm:$0xff]  ;;  %s2525_s29 = sld [smem:[#allocation4 + %s2323_s17]]  ;;  %v626_v31 = vlaneseq }
 0x1fc   : > { %v2528_v32 = vld [vmem:[%s2464_s22 + $0x18] sm:$0xff]  ;;  %v2531_v33 = vld [vmem:[%s2464_s22 + $0x20] sm:$0xff]  ;;  %v2534_v34 = vld [vmem:[%s2464_s22 + $0x28] sm:$0xff] }
 0x1fd   : > { %v2537_v35 = vld [vmem:[%s2464_s22 + $0x30] sm:$0xff]  ;;  %v2542_v37 = vshrl.u32 %v626_v31, 7 }
 0x1ff   : > { %v2545_v38 = vadd.s32 8, %v2542_v37  ;;  %v2548_v39 = vadd.s32 16, %v2542_v37  ;;  %v2551_v40 = vadd.s32 24, %v2542_v37  ;;  %v2554_v41 = vadd.s32 48, %v2542_v37 }
 0x201   : > { %v2540_v36 = vld [vmem:[%s2464_s22 + $0x38] sm:$0xff]  ;;  %p1942_p8 = scmp.ne.s32.totalorder %s2525_s29, 1 }
 0x202   : > { %s2342_s17 = smov (!%p1942_p8), 32   ;;  %s2343_s30 = smov (!%p1942_p8), 64  }
 0x203   : > { %638 = sbr.rel (%p1942_p8) target bundleno = 665 (0x299), region = 64 }
 0x208   : > { %v691_v42 = vrot.slane %v2528_v32, 7  ;;  %v692_v43 = vrot.slane %v2531_v33, 7  ;;  %v693_v44 = vrot.slane %v2534_v34, 7  ;;  %vm696_vm2 = vcmp.lt.s32.totalorder %v2542_v37, 1 }
 0x209   : > { %v688_v45 = vrot.slane %v2516_v28, 7  ;;  %v689_v46 = vrot.slane %v2519_v29, 7  ;;  %v695_v47 = vrot.slane %v2540_v36, 7  ;;  %vm705_vm3 = vcmp.ge.s32.totalorder %v2542_v37, 1 }
 0x20a   : > { %v699_v48 = vsel %vm696_vm2, %v692_v43, %v693_v44  ;;  %v700_v49 = vsel %vm696_vm2, %v691_v42, %v692_v43  ;;  %v694_v50 = vrot.slane %v2537_v35, 7  ;;  %v690_v55 = vrot.slane %v2522_v30, 7 }
 0x20b   : > { %v2104_v51 = vpack.i.bf16 %v699_v48, %v700_v49  ;;  %v703_v52 = vsel %vm696_vm2, %v688_v45, %v689_v46  ;;  %v704_v53 = vsel %vm696_vm2, %v695_v47, %v688_v45  ;;  %v2114_v59 = vpack.i.bf16 %v2519_v29, %v2516_v28 }
 0x20c   : > { %v729_v54 = vsel %vm705_vm3, %v704_v53, 0.0  ;;  %v697_v57 = vsel %vm696_vm2, %v694_v50, %v695_v47  ;;  %v698_v58 = vsel %vm696_vm2, %v693_v44, %v694_v50  ;;  %v701_v60 = vsel %vm696_vm2, %v690_v55, %v691_v42 }
 0x20d   : > { %2105 = vrot.lane.b32.xlu1 %v2104_v51, %s2342_s17  ;;  %v2094_v56 = vpack.i.bf16 %v703_v52, %v729_v54  ;;  %v702_v61 = vsel %vm696_vm2, %v689_v46, %v690_v55  ;;  %2115 = vrot.lane.b32.xlu2 %v2114_v59, %s2343_s30  ;;  %v2109_v62 = vpack.i.bf16 %v697_v57, %v698_v58  ;;  %v639_v3 = vrot.slane %v2516_v28, 6 }
 0x20e   : > { %v2099_v63 = vpack.i.bf16 %v701_v60, %v702_v61  ;;  %v2119_v0 = vpack.i.bf16 %v2528_v32, %v2522_v30  ;;  %v2129_v1 = vpack.i.bf16 %v2540_v36, %v2537_v35  ;;  %v2124_v2 = vpack.i.bf16 %v2534_v34, %v2531_v33 }
 0x20f   : > { %2095 = vrot.lane.b32.xlu0 %v2094_v56, %s2342_s17  ;;  %v646_v4 = vrot.slane %v2540_v36, 6  ;;  %vm647_vm4 = vcmp.lt.s32.totalorder %v2542_v37, 2  ;;  %v640_v6 = vrot.slane %v2519_v29, 6  ;;  %vm656_vm5 = vcmp.ge.s32.totalorder %v2542_v37, 2 }
 0x210   : > { %vm801_vm6 = vcmask 261120   ;;  %vm810_vm7 = vcmask 523264   ;;  %vm827_vm8 = vcmask 781312   ;;  %v641_v20 = vrot.slane %v2522_v30, 6 }
 0x211   : > { %v655_v7 = vsel %vm647_vm4, %v646_v4, %v639_v3  ;;  %v654_v10 = vsel %vm647_vm4, %v639_v3, %v640_v6  ;;  %v642_v24 = vrot.slane %v2528_v32, 6  ;;  %v645_v44 = vrot.slane %v2537_v35, 6 }
 0x212   : > { %v680_v11 = vsel %vm656_vm5, %v655_v7, 0.0  ;;  %v653_v31 = vsel %vm647_vm4, %v640_v6, %v641_v20  ;;  %v643_v47 = vrot.slane %v2531_v33, 6  ;;  %v644_v48 = vrot.slane %v2534_v34, 6 }
 0x213   : > { %v652_v27 = vsel %vm647_vm4, %v641_v20, %v642_v24  ;;  %v648_v55 = vsel %vm647_vm4, %v645_v44, %v646_v4 }
 0x214   : > { %v649_v56 = vsel %vm647_vm4, %v644_v48, %v645_v44 }
 0x215   : > { %2110 = vrot.lane.b32.xlu1 %v2109_v62, %s2342_s17  ;;  %2120 = vrot.lane.b32.xlu2 %v2119_v0, %s2343_s30  ;;  %v650_v62 = vsel %vm647_vm4, %v643_v47, %v644_v48 }
 0x217   : > { %2100 = vrot.lane.b32.xlu0 %v2099_v63, %s2342_s17  ;;  %v651_v63 = vsel %vm647_vm4, %v642_v24, %v643_v47 }
 0x21d   : > { %2130 = vrot.lane.b32.xlu1 %v2129_v1, %s2343_s30 }
 0x21f   : > { %2125 = vrot.lane.b32.xlu0 %v2124_v2, %s2343_s30 }
 0x267   : > { %v2116_v5 = vpop.permute.xlu2 %2115 }
 0x268   : > { %v2118_v12 = vunpack.i.h.bf16 %v2116_v5  ;;  %v2117_v13 = vunpack.i.l.bf16 %v2116_v5 }
 0x26f   : > { %v2121_v23 = vpop.permute.xlu2 %2120 }
 0x270   : > { %v2123_v42 = vunpack.i.h.bf16 %v2121_v23  ;;  %v2122_v43 = vunpack.i.l.bf16 %v2121_v23 }
 0x27f   : > { %v2106_v8 = vpop.permute.xlu1 %2105 }
 0x280   : > { %v2108_v59 = vunpack.i.h.bf16 %v2106_v8  ;;  %v2107_v60 = vunpack.i.l.bf16 %v2106_v8 }
 0x281   : > { %v2096_v9 = vpop.permute.xlu0 %2095 }
 0x282   : > { %v2098_v14 = vunpack.i.h.bf16 %v2096_v9  ;;  %v2097_v15 = vunpack.i.l.bf16 %v2096_v9  ;;  %v806_v9 = vsel %vm801_vm6, %v651_v63, %v2107_v60 }
 0x284   : > { %v802_v16 = vsel %vm801_vm6, %v680_v11, %v2097_v15  ;;  %v803_v17 = vsel %vm801_vm6, %v654_v10, %v2098_v14  ;;  %v807_v10 = vsel %vm801_vm6, %v650_v62, %v2108_v59 }
 0x285   : > { %v811_v18 = vsel %vm810_vm7, %v802_v16, %v2117_v13  ;;  %v812_v19 = vsel %vm810_vm7, %v803_v17, %v2118_v12 }
 0x286   : > { %v819_v21 = vpack.c.bf16 %v811_v18, %v811_v18  ;;  %v820_v22 = vpack.c.bf16 %v812_v19, %v812_v19 }
 0x287   : > { %v2111_v25 = vpop.permute.xlu1 %2110 }
 0x288   : > { %828 = vst.msk [vmem:[#allocation2] sm:$0xf] %vm827_vm8, %v819_v21  ;;  %v2113_v51 = vunpack.i.h.bf16 %v2111_v25  ;;  %v2112_v52 = vunpack.i.l.bf16 %v2111_v25 }
 0x289   : > { %829 = vst.msk [vmem:[#allocation2 + $0x4] sm:$0xf] %vm827_vm8, %v820_v22  ;;  %v2101_v26 = vpop.permute.xlu0 %2100 }
 0x28a   : > { %v2103_v45 = vunpack.i.h.bf16 %v2101_v26  ;;  %v2102_v46 = vunpack.i.l.bf16 %v2101_v26  ;;  %v808_v2 = vsel %vm801_vm6, %v649_v56, %v2112_v52  ;;  %v809_v3 = vsel %vm801_vm6, %v648_v55, %v2113_v51 }
 0x28c   : > { %v804_v49 = vsel %vm801_vm6, %v653_v31, %v2102_v46  ;;  %v805_v50 = vsel %vm801_vm6, %v652_v27, %v2103_v45 }
 0x28d   : > { %v813_v53 = vsel %vm810_vm7, %v804_v49, %v2122_v43  ;;  %v814_v54 = vsel %vm810_vm7, %v805_v50, %v2123_v42 }
 0x28e   : > { %v821_v57 = vpack.c.bf16 %v813_v53, %v813_v53  ;;  %v822_v58 = vpack.c.bf16 %v814_v54, %v814_v54 }
 0x28f   : > { %v2131_v61 = vpop.permute.xlu1 %2130 }
 0x290   : > { %830 = vst.msk [vmem:[#allocation2 + $0x8] sm:$0xf] %vm827_vm8, %v821_v57  ;;  %v2133_v0 = vunpack.i.h.bf16 %v2131_v61  ;;  %v2132_v1 = vunpack.i.l.bf16 %v2131_v61 }
 0x291   : > { %831 = vst.msk [vmem:[#allocation2 + $0xc] sm:$0xf] %vm827_vm8, %v822_v58  ;;  %v2126_v4 = vpop.permute.xlu0 %2125 }
 0x292   : > { %v817_v5 = vsel %vm810_vm7, %v808_v2, %v2132_v1  ;;  %v818_v6 = vsel %vm810_vm7, %v809_v3, %v2133_v0  ;;  %v2128_v7 = vunpack.i.h.bf16 %v2126_v4  ;;  %v2127_v8 = vunpack.i.l.bf16 %v2126_v4 }
 0x293   : > { %v825_v11 = vpack.c.bf16 %v817_v5, %v817_v5  ;;  %v826_v12 = vpack.c.bf16 %v818_v6, %v818_v6 }
 0x294   : > { %v815_v13 = vsel %vm810_vm7, %v806_v9, %v2127_v8  ;;  %v816_v14 = vsel %vm810_vm7, %v807_v10, %v2128_v7 }
 0x295   : > { %834 = vst.msk [vmem:[#allocation2 + $0x18] sm:$0xf] %vm827_vm8, %v825_v11  ;;  %v823_v15 = vpack.c.bf16 %v815_v13, %v815_v13  ;;  %v824_v16 = vpack.c.bf16 %v816_v14, %v816_v14 }
 0x296   : > { %835 = vst.msk [vmem:[#allocation2 + $0x1c] sm:$0xf] %vm827_vm8, %v826_v12 }
 0x297   : > { %832 = vst.msk [vmem:[#allocation2 + $0x10] sm:$0xf] %vm827_vm8, %v823_v15 }
 0x298   : > { %833 = vst.msk [vmem:[#allocation2 + $0x14] sm:$0xf] %vm827_vm8, %v824_v16 }
 0x299 PF: > { %p1943_p9 = scmp.ne.s32.totalorder %s2525_s29, 3 }
 0x29a   : > { %s2344_s11 = smov (!%p1943_p9), 32   ;;  %s2345_s13 = smov (!%p1943_p9), 64  }
 0x29b   : > { %839 = sbr.rel (%p1943_p9) target bundleno = 817 (0x331), region = 68 }
 0x2a0   : > { %v892_v17 = vrot.slane %v2528_v32, 5  ;;  %v893_v18 = vrot.slane %v2531_v33, 5  ;;  %v894_v19 = vrot.slane %v2534_v34, 5  ;;  %vm897_vm9 = vcmp.lt.s32.totalorder %v2542_v37, 3 }
 0x2a1   : > { %v889_v20 = vrot.slane %v2516_v28, 5  ;;  %v890_v21 = vrot.slane %v2519_v29, 5  ;;  %v896_v22 = vrot.slane %v2540_v36, 5  ;;  %vm906_vm10 = vcmp.ge.s32.totalorder %v2542_v37, 3 }
 0x2a2   : > { %v900_v23 = vsel %vm897_vm9, %v893_v18, %v894_v19  ;;  %v901_v24 = vsel %vm897_vm9, %v892_v17, %v893_v18  ;;  %v895_v25 = vrot.slane %v2537_v35, 5  ;;  %v891_v43 = vrot.slane %v2522_v30, 5 }
 0x2a3   : > { %v2144_v26 = vpack.i.bf16 %v900_v23, %v901_v24  ;;  %v904_v27 = vsel %vm897_vm9, %v889_v20, %v890_v21  ;;  %v905_v31 = vsel %vm897_vm9, %v896_v22, %v889_v20  ;;  %v2154_v47 = vpack.i.bf16 %v2519_v29, %v2516_v28 }
 0x2a4   : > { %v930_v42 = vsel %vm906_vm10, %v905_v31, 0.0  ;;  %v898_v45 = vsel %vm897_vm9, %v895_v25, %v896_v22  ;;  %v899_v46 = vsel %vm897_vm9, %v894_v19, %v895_v25  ;;  %v902_v48 = vsel %vm897_vm9, %v891_v43, %v892_v17 }
 0x2a5   : > { %2145 = vrot.lane.b32.xlu1 %v2144_v26, %s2344_s11  ;;  %v2134_v44 = vpack.i.bf16 %v904_v27, %v930_v42  ;;  %v903_v49 = vsel %vm897_vm9, %v890_v21, %v891_v43  ;;  %2155 = vrot.lane.b32.xlu2 %v2154_v47, %s2345_s13  ;;  %v2149_v50 = vpack.i.bf16 %v898_v45, %v899_v46  ;;  %v840_v55 = vrot.slane %v2516_v28, 2 }
 0x2a6   : > { %v2139_v51 = vpack.i.bf16 %v902_v48, %v903_v49  ;;  %v2159_v52 = vpack.i.bf16 %v2528_v32, %v2522_v30  ;;  %v2169_v53 = vpack.i.bf16 %v2540_v36, %v2537_v35  ;;  %v2164_v54 = vpack.i.bf16 %v2534_v34, %v2531_v33 }
 0x2a7   : > { %2135 = vrot.lane.b32.xlu0 %v2134_v44, %s2344_s11  ;;  %v847_v56 = vrot.slane %v2540_v36, 2  ;;  %vm848_vm11 = vcmp.lt.s32.totalorder %v2542_v37, 6  ;;  %v841_v58 = vrot.slane %v2519_v29, 2  ;;  %vm857_vm12 = vcmp.ge.s32.totalorder %v2542_v37, 6 }
 0x2a8   : > { %vm1002_vm13 = vcmask 261120   ;;  %vm1011_vm14 = vcmask 523264   ;;  %vm1028_vm15 = vcmask 781312   ;;  %v842_v8 = vrot.slane %v2522_v30, 2 }
 0x2a9   : > { %v856_v59 = vsel %vm848_vm11, %v847_v56, %v840_v55  ;;  %v855_v62 = vsel %vm848_vm11, %v840_v55, %v841_v58  ;;  %v843_v12 = vrot.slane %v2528_v32, 2  ;;  %v846_v19 = vrot.slane %v2537_v35, 2 }
 0x2aa   : > { %v881_v63 = vsel %vm857_vm12, %v856_v59, 0.0  ;;  %v854_v16 = vsel %vm848_vm11, %v841_v58, %v842_v8  ;;  %v844_v22 = vrot.slane %v2531_v33, 2  ;;  %v845_v23 = vrot.slane %v2534_v34, 2 }
 0x2ab   : > { %v853_v15 = vsel %vm848_vm11, %v842_v8, %v843_v12  ;;  %v849_v43 = vsel %vm848_vm11, %v846_v19, %v847_v56 }
 0x2ac   : > { %v850_v44 = vsel %vm848_vm11, %v845_v23, %v846_v19 }
 0x2ad   : > { %2150 = vrot.lane.b32.xlu1 %v2149_v50, %s2344_s11  ;;  %2160 = vrot.lane.b32.xlu2 %v2159_v52, %s2345_s13  ;;  %v851_v50 = vsel %vm848_vm11, %v844_v22, %v845_v23 }
 0x2af   : > { %2140 = vrot.lane.b32.xlu0 %v2139_v51, %s2344_s11  ;;  %v852_v51 = vsel %vm848_vm11, %v843_v12, %v844_v22 }
 0x2b5   : > { %2170 = vrot.lane.b32.xlu1 %v2169_v53, %s2345_s13 }
 0x2b7   : > { %2165 = vrot.lane.b32.xlu0 %v2164_v54, %s2345_s13 }
 0x2ff   : > { %v2156_v57 = vpop.permute.xlu2 %2155 }
 0x300   : > { %v2158_v0 = vunpack.i.h.bf16 %v2156_v57  ;;  %v2157_v1 = vunpack.i.l.bf16 %v2156_v57 }
 0x307   : > { %v2161_v11 = vpop.permute.xlu2 %2160 }
 0x308   : > { %v2163_v17 = vunpack.i.h.bf16 %v2161_v11  ;;  %v2162_v18 = vunpack.i.l.bf16 %v2161_v11 }
 0x317   : > { %v2146_v60 = vpop.permute.xlu1 %2145 }
 0x318   : > { %v2148_v47 = vunpack.i.h.bf16 %v2146_v60  ;;  %v2147_v48 = vunpack.i.l.bf16 %v2146_v60 }
 0x319   : > { %v2136_v61 = vpop.permute.xlu0 %2135 }
 0x31a   : > { %v2138_v2 = vunpack.i.h.bf16 %v2136_v61  ;;  %v2137_v3 = vunpack.i.l.bf16 %v2136_v61  ;;  %v1007_v61 = vsel %vm1002_vm13, %v852_v51, %v2147_v48 }
 0x31c   : > { %v1003_v4 = vsel %vm1002_vm13, %v881_v63, %v2137_v3  ;;  %v1004_v5 = vsel %vm1002_vm13, %v855_v62, %v2138_v2  ;;  %v1008_v62 = vsel %vm1002_vm13, %v851_v50, %v2148_v47 }
 0x31d   : > { %v1012_v6 = vsel %vm1011_vm14, %v1003_v4, %v2157_v1  ;;  %v1013_v7 = vsel %vm1011_vm14, %v1004_v5, %v2158_v0 }
 0x31e   : > { %v1020_v9 = vpack.c.bf16 %v1012_v6, %v1012_v6  ;;  %v1021_v10 = vpack.c.bf16 %v1013_v7, %v1013_v7 }
 0x31f   : > { %v2151_v13 = vpop.permute.xlu1 %2150 }
 0x320   : > { %1029 = vst.msk [vmem:[#allocation2] sm:$0xf] %vm1028_vm15, %v1020_v9  ;;  %v2153_v26 = vunpack.i.h.bf16 %v2151_v13  ;;  %v2152_v27 = vunpack.i.l.bf16 %v2151_v13 }
 0x321   : > { %1030 = vst.msk [vmem:[#allocation2 + $0x4] sm:$0xf] %vm1028_vm15, %v1021_v10  ;;  %v2141_v14 = vpop.permute.xlu0 %2140 }
 0x322   : > { %v2143_v20 = vunpack.i.h.bf16 %v2141_v14  ;;  %v2142_v21 = vunpack.i.l.bf16 %v2141_v14  ;;  %v1009_v54 = vsel %vm1002_vm13, %v850_v44, %v2152_v27  ;;  %v1010_v55 = vsel %vm1002_vm13, %v849_v43, %v2153_v26 }
 0x324   : > { %v1005_v24 = vsel %vm1002_vm13, %v854_v16, %v2142_v21  ;;  %v1006_v25 = vsel %vm1002_vm13, %v853_v15, %v2143_v20 }
 0x325   : > { %v1014_v31 = vsel %vm1011_vm14, %v1005_v24, %v2162_v18  ;;  %v1015_v42 = vsel %vm1011_vm14, %v1006_v25, %v2163_v17 }
 0x326   : > { %v1022_v45 = vpack.c.bf16 %v1014_v31, %v1014_v31  ;;  %v1023_v46 = vpack.c.bf16 %v1015_v42, %v1015_v42 }
 0x327   : > { %v2171_v49 = vpop.permute.xlu1 %2170 }
 0x328   : > { %1031 = vst.msk [vmem:[#allocation2 + $0x8] sm:$0xf] %vm1028_vm15, %v1022_v45  ;;  %v2173_v52 = vunpack.i.h.bf16 %v2171_v49  ;;  %v2172_v53 = vunpack.i.l.bf16 %v2171_v49 }
 0x329   : > { %1032 = vst.msk [vmem:[#allocation2 + $0xc] sm:$0xf] %vm1028_vm15, %v1023_v46  ;;  %v2166_v56 = vpop.permute.xlu0 %2165 }
 0x32a   : > { %v1018_v57 = vsel %vm1011_vm14, %v1009_v54, %v2172_v53  ;;  %v1019_v58 = vsel %vm1011_vm14, %v1010_v55, %v2173_v52  ;;  %v2168_v59 = vunpack.i.h.bf16 %v2166_v56  ;;  %v2167_v60 = vunpack.i.l.bf16 %v2166_v56 }
 0x32b   : > { %v1026_v63 = vpack.c.bf16 %v1018_v57, %v1018_v57  ;;  %v1027_v0 = vpack.c.bf16 %v1019_v58, %v1019_v58 }
 0x32c   : > { %v1016_v1 = vsel %vm1011_vm14, %v1007_v61, %v2167_v60  ;;  %v1017_v2 = vsel %vm1011_vm14, %v1008_v62, %v2168_v59 }
 0x32d   : > { %1035 = vst.msk [vmem:[#allocation2 + $0x18] sm:$0xf] %vm1028_vm15, %v1026_v63  ;;  %v1024_v3 = vpack.c.bf16 %v1016_v1, %v1016_v1  ;;  %v1025_v4 = vpack.c.bf16 %v1017_v2, %v1017_v2 }
 0x32e   : > { %1036 = vst.msk [vmem:[#allocation2 + $0x1c] sm:$0xf] %vm1028_vm15, %v1027_v0 }
 0x32f   : > { %1033 = vst.msk [vmem:[#allocation2 + $0x10] sm:$0xf] %vm1028_vm15, %v1024_v3 }
 0x330   : > { %1034 = vst.msk [vmem:[#allocation2 + $0x14] sm:$0xf] %vm1028_vm15, %v1025_v4 }
 0x331 PF: > { %p1944_p10 = scmp.ne.s32.totalorder %s2525_s29, 9 }
 0x332   : > { %s2346_s12 = smov (!%p1944_p10), 32   ;;  %s2348_s14 = smov (!%p1944_p10), 64  }
 0x333   : > { %1040 = sbr.rel (%p1944_p10) target bundleno = 969 (0x3c9), region = 72 }
 0x338   : > { %v1092_v5 = vrot.slane %v2522_v30, 7  ;;  %v1093_v6 = vrot.slane %v2528_v32, 7  ;;  %v1094_v7 = vrot.slane %v2531_v33, 7  ;;  %vm1098_vm0 = vcmp.lt.s32.totalorder %v2542_v37, 1 }
 0x339   : > { %v1090_v8 = vrot.slane %v2516_v28, 7  ;;  %v1097_v9 = vrot.slane %v2540_v36, 7  ;;  %vm1108_vm1 = vcmp.ge.s32.totalorder %v2545_v38, 9  ;;  %v1095_v12 = vrot.slane %v2534_v34, 7 }
 0x33a   : > { %v1102_v10 = vsel %vm1098_vm0, %v1093_v6, %v1094_v7  ;;  %v1103_v11 = vsel %vm1098_vm0, %v1092_v5, %v1093_v6  ;;  %v1096_v13 = vrot.slane %v2537_v35, 7  ;;  %v1091_v17 = vrot.slane %v2519_v29, 7 }
 0x33b   : > { %v2184_v14 = vpack.i.bf16 %v1102_v10, %v1103_v11  ;;  %v1106_v15 = vsel %vm1098_vm0, %v1097_v9, %v1090_v8  ;;  %v2347_v38 = vmov 0.0   ;;  %v1101_v20 = vsel %vm1098_vm0, %v1094_v7, %v1095_v12 }
 0x33c   : > { %v1132_v16 = vsel %vm1108_vm1, %v1106_v15, 0.0  ;;  %v1100_v19 = vsel %vm1098_vm0, %v1095_v12, %v1096_v13  ;;  %v2194_v21 = vpack.i.bf16 %v2519_v29, %v2516_v28  ;;  %v1104_v22 = vsel %vm1098_vm0, %v1091_v17, %v1092_v5 }
 0x33d   : > { %2185 = vrot.lane.b32.xlu1 %v2184_v14, %s2346_s12  ;;  %v2174_v18 = vpack.i.bf16 %v1132_v16, %v2347_v38  ;;  %v1105_v23 = vsel %vm1098_vm0, %v1090_v8, %v1091_v17  ;;  %v2189_v24 = vpack.i.bf16 %v1100_v19, %v1101_v20  ;;  %v2199_v26 = vpack.i.bf16 %v2528_v32, %v2522_v30 }
 0x33e   : > { %2195 = vrot.lane.b32.xlu2 %v2194_v21, %s2348_s14  ;;  %v2179_v25 = vpack.i.bf16 %v1104_v22, %v1105_v23  ;;  %v2209_v27 = vpack.i.bf16 %v2540_v36, %v2537_v35  ;;  %v2204_v31 = vpack.i.bf16 %v2534_v34, %v2531_v33  ;;  %vm1203_vm2 = vcmask 261120  }
 0x33f   : > { %2175 = vrot.lane.b32.xlu0 %v2174_v18, %s2346_s12  ;;  %vm1212_vm3 = vcmask 523264   ;;  %v1041_v49 = vrot.slane %v2516_v28, 6  ;;  %v1048_v50 = vrot.slane %v2540_v36, 6  ;;  %vm1049_vm4 = vcmp.lt.s32.totalorder %v2542_v37, 2 }
 0x340   : > { %vm1229_vm5 = vcmask 781312   ;;  %vm1060_vm6 = vcmp.ge.s32.totalorder %v2548_v39, 18  ;;  %v1042_v59 = vrot.slane %v2519_v29, 6  ;;  %v1045_v2 = vrot.slane %v2531_v33, 6 }
 0x341   : > { %v1057_v57 = vsel %vm1049_vm4, %v1048_v50, %v1041_v49  ;;  %v1046_v3 = vrot.slane %v2534_v34, 6  ;;  %v1043_v5 = vrot.slane %v2522_v30, 6  ;;  %v1044_v6 = vrot.slane %v2528_v32, 6 }
 0x342   : > { %v1056_v62 = vsel %vm1049_vm4, %v1041_v49, %v1042_v59  ;;  %v1084_v63 = vsel %vm1060_vm6, %v1057_v57, 0.0 }
 0x343   : > { %v1052_v13 = vsel %vm1049_vm4, %v1045_v2, %v1046_v3  ;;  %v1053_v14 = vsel %vm1049_vm4, %v1044_v6, %v1045_v2  ;;  %v1054_v19 = vsel %vm1049_vm4, %v1043_v5, %v1044_v6  ;;  %v1055_v20 = vsel %vm1049_vm4, %v1042_v59, %v1043_v5 }
 0x345   : > { %2190 = vrot.lane.b32.xlu1 %v2189_v24, %s2346_s12 }
 0x346   : > { %2200 = vrot.lane.b32.xlu2 %v2199_v26, %s2348_s14 }
 0x347   : > { %2180 = vrot.lane.b32.xlu0 %v2179_v25, %s2346_s12 }
 0x34d   : > { %2210 = vrot.lane.b32.xlu1 %v2209_v27, %s2348_s14 }
 0x34f   : > { %2205 = vrot.lane.b32.xlu0 %v2204_v31, %s2348_s14 }
 0x398   : > { %v2196_v42 = vpop.permute.xlu2 %2195 }
 0x399   : > { %v2198_v45 = vunpack.i.h.bf16 %v2196_v42  ;;  %v2197_v46 = vunpack.i.l.bf16 %v2196_v42 }
 0x3a0   : > { %v2201_v58 = vpop.permute.xlu2 %2200 }
 0x3a1   : > { %v2203_v0 = vunpack.i.h.bf16 %v2201_v58  ;;  %v2202_v1 = vunpack.i.l.bf16 %v2201_v58 }
 0x3af   : > { %v2759_v43 = vpop.permute.xlu1 %2185 }
 0x3b0   : > { %v2188_v17 = vunpack.i.h.bf16 %v2759_v43  ;;  %v2187_v38 = vunpack.i.l.bf16 %v2759_v43 }
 0x3b1   : > { %v2176_v44 = vpop.permute.xlu0 %2175 }
 0x3b2   : > { %v2178_v47 = vunpack.i.h.bf16 %v2176_v44  ;;  %v2177_v48 = vunpack.i.l.bf16 %v2176_v44  ;;  %v1208_v43 = vsel %vm1203_vm2, %v1055_v20, %v2187_v38  ;;  %v1209_v44 = vsel %vm1203_vm2, %v1054_v19, %v2188_v17 }
 0x3b4   : > { %v1205_v51 = vsel %vm1203_vm2, 0.0, %v2178_v47  ;;  %v1204_v52 = vsel %vm1203_vm2, 0.0, %v2177_v48 }
 0x3b5   : > { %v1213_v53 = vsel %vm1212_vm3, %v1204_v52, %v2197_v46  ;;  %v1214_v54 = vsel %vm1212_vm3, %v1205_v51, %v2198_v45 }
 0x3b6   : > { %v1221_v55 = vpack.c.bf16 %v1213_v53, %v1213_v53  ;;  %v1222_v56 = vpack.c.bf16 %v1214_v54, %v1214_v54 }
 0x3b7   : > { %v2191_v60 = vpop.permute.xlu1 %2190 }
 0x3b8   : > { %1230 = vst.msk [vmem:[#allocation2] sm:$0xf] %vm1229_vm5, %v1221_v55  ;;  %v2193_v9 = vunpack.i.h.bf16 %v2191_v60  ;;  %v2192_v10 = vunpack.i.l.bf16 %v2191_v60 }
 0x3b9   : > { %1231 = vst.msk [vmem:[#allocation2 + $0x4] sm:$0xf] %vm1229_vm5, %v1222_v56  ;;  %v2181_v61 = vpop.permute.xlu0 %2180 }
 0x3ba   : > { %v2183_v39 = vunpack.i.h.bf16 %v2181_v61  ;;  %v2182_v4 = vunpack.i.l.bf16 %v2181_v61  ;;  %v1210_v23 = vsel %vm1203_vm2, %v1053_v14, %v2192_v10  ;;  %v1211_v24 = vsel %vm1203_vm2, %v1052_v13, %v2193_v9 }
 0x3bc   : > { %v1206_v7 = vsel %vm1203_vm2, %v1084_v63, %v2182_v4  ;;  %v1207_v8 = vsel %vm1203_vm2, %v1056_v62, %v2183_v39 }
 0x3bd   : > { %v1215_v11 = vsel %vm1212_vm3, %v1206_v7, %v2202_v1  ;;  %v1216_v12 = vsel %vm1212_vm3, %v1207_v8, %v2203_v0 }
 0x3be   : > { %v1223_v15 = vpack.c.bf16 %v1215_v11, %v1215_v11  ;;  %v1224_v16 = vpack.c.bf16 %v1216_v12, %v1216_v12 }
 0x3bf   : > { %v2211_v18 = vpop.permute.xlu1 %2210 }
 0x3c0   : > { %1232 = vst.msk [vmem:[#allocation2 + $0x8] sm:$0xf] %vm1229_vm5, %v1223_v15  ;;  %v2213_v21 = vunpack.i.h.bf16 %v2211_v18  ;;  %v2212_v22 = vunpack.i.l.bf16 %v2211_v18 }
 0x3c1   : > { %1233 = vst.msk [vmem:[#allocation2 + $0xc] sm:$0xf] %vm1229_vm5, %v1224_v16  ;;  %v2206_v25 = vpop.permute.xlu0 %2205 }
 0x3c2   : > { %v1219_v26 = vsel %vm1212_vm3, %v1210_v23, %v2212_v22  ;;  %v1220_v27 = vsel %vm1212_vm3, %v1211_v24, %v2213_v21  ;;  %v2208_v31 = vunpack.i.h.bf16 %v2206_v25  ;;  %v2207_v42 = vunpack.i.l.bf16 %v2206_v25 }
 0x3c3   : > { %v1227_v45 = vpack.c.bf16 %v1219_v26, %v1219_v26  ;;  %v1228_v46 = vpack.c.bf16 %v1220_v27, %v1220_v27 }
 0x3c4   : > { %v1217_v47 = vsel %vm1212_vm3, %v1208_v43, %v2207_v42  ;;  %v1218_v48 = vsel %vm1212_vm3, %v1209_v44, %v2208_v31 }
 0x3c5   : > { %1236 = vst.msk [vmem:[#allocation2 + $0x18] sm:$0xf] %vm1229_vm5, %v1227_v45  ;;  %v1225_v49 = vpack.c.bf16 %v1217_v47, %v1217_v47  ;;  %v1226_v50 = vpack.c.bf16 %v1218_v48, %v1218_v48 }
 0x3c6   : > { %1237 = vst.msk [vmem:[#allocation2 + $0x1c] sm:$0xf] %vm1229_vm5, %v1228_v46 }
 0x3c7   : > { %1234 = vst.msk [vmem:[#allocation2 + $0x10] sm:$0xf] %vm1229_vm5, %v1225_v49 }
 0x3c8   : > { %1235 = vst.msk [vmem:[#allocation2 + $0x14] sm:$0xf] %vm1229_vm5, %v1226_v50 }
 0x3c9 PF: > { %p1945_p11 = scmp.ne.s32.totalorder %s2525_s29, 27 }
 0x3ca   : > { %s2350_s16 = smov (!%p1945_p11), 32   ;;  %s2351_s18 = smov (!%p1945_p11), 64  }
 0x3cb   : > { %1241 = sbr.rel (%p1945_p11) target bundleno = 1120 (0x460), region = 76 }
 0x3d0   : > { %v1291_v51 = vrot.slane %v2516_v28, 5  ;;  %v1298_v52 = vrot.slane %v2540_v36, 5  ;;  %vm1299_vm7 = vcmp.lt.s32.totalorder %v2542_v37, 3  ;;  %vm1311_vm8 = vcmp.ge.s32.totalorder %v2551_v40, 27 }
 0x3d1   : > { %v1292_v53 = vrot.slane %v2519_v29, 5  ;;  %v1293_v54 = vrot.slane %v2522_v30, 5  ;;  %v2349_v56 = vmov 0.0   ;;  %v1294_v59 = vrot.slane %v2528_v32, 5 }
 0x3d2   : > { %v1307_v55 = vsel %vm1299_vm7, %v1298_v52, %v1291_v51  ;;  %2215 = vrot.lane.b32.xlu0 %v2349_v56, %s2350_s16  ;;  %v1295_v40 = vrot.slane %v2531_v33, 5  ;;  %v2234_v62 = vpack.i.bf16 %v2519_v29, %v2516_v28  ;;  %v2239_v3 = vpack.i.bf16 %v2528_v32, %v2522_v30 }
 0x3d3   : > { %v1305_v57 = vsel %vm1299_vm7, %v1292_v53, %v1293_v54  ;;  %v1306_v58 = vsel %vm1299_vm7, %v1291_v51, %v1292_v53  ;;  %v1335_v60 = vsel %vm1311_vm8, %v1307_v55, 0.0  ;;  %v1304_v1 = vsel %vm1299_vm7, %v1293_v54, %v1294_v59 }
 0x3d4   : > { %v2224_v61 = vpack.i.bf16 %v1305_v57, %v1306_v58  ;;  %v2219_v63 = vpack.i.bf16 %v1335_v60, %v2349_v56  ;;  %v1303_v0 = vsel %vm1299_vm7, %v1294_v59, %v1295_v40  ;;  %2235 = vrot.lane.b32.xlu2 %v2234_v62, %s2351_s18  ;;  %v2244_v39 = vpack.i.bf16 %v2534_v34, %v2531_v33 }
 0x3d5   : > { %v2229_v2 = vpack.i.bf16 %v1303_v0, %v1304_v1  ;;  %v2249_v4 = vpack.i.bf16 %v2540_v36, %v2537_v35  ;;  %vm1404_vm9 = vcmask 261120   ;;  %vm1413_vm10 = vcmask 523264  }
 0x3d6   : > { %2225 = vrot.lane.b32.xlu1 %v2224_v61, %s2350_s16  ;;  %vm1430_vm11 = vcmask 781312   ;;  %v1242_v26 = vrot.slane %v2516_v28, 2  ;;  %v1249_v27 = vrot.slane %v2540_v36, 2  ;;  %vm1250_vm12 = vcmp.lt.s32.totalorder %v2542_v37, 6 }
 0x3d7   : > { %v1243_v47 = vrot.slane %v2519_v29, 2  ;;  %vm1265_vm13 = vcmp.ge.s32.totalorder %v2554_v41, 54 }
 0x3d8   : > { %v1258_v48 = vsel %vm1250_vm12, %v1249_v27, %v1242_v26 }
 0x3d9   : > { %v1257_v56 = vsel %vm1250_vm12, %v1242_v26, %v1243_v47  ;;  %v1289_v57 = vsel %vm1265_vm13, %v1258_v48, 0.0 }
 0x3da   : > { %2220 = vrot.lane.b32.xlu0 %v2219_v63, %s2350_s16 }
 0x3dc   : > { %2240 = vrot.lane.b32.xlu2 %v2239_v3, %s2351_s18 }
 0x3de   : > { %2230 = vrot.lane.b32.xlu1 %v2229_v2, %s2350_s16 }
 0x3e2   : > { %2245 = vrot.lane.b32.xlu0 %v2244_v39, %s2351_s18 }
 0x3e6   : > { %2250 = vrot.lane.b32.xlu1 %v2249_v4, %s2351_s18 }
 0x42e   : > { %v2236_v5 = vpop.permute.xlu2 %2235 }
 0x42f   : > { %v2238_v7 = vunpack.i.h.bf16 %v2236_v5  ;;  %v2237_v8 = vunpack.i.l.bf16 %v2236_v5 }
 0x436   : > { %v2241_v38 = vpop.permute.xlu2 %2240 }
 0x437   : > { %v2243_v19 = vunpack.i.h.bf16 %v2241_v38  ;;  %v2242_v20 = vunpack.i.l.bf16 %v2241_v38 }
 0x444   : > { %v2216_v6 = vpop.permute.xlu0 %2215 }
 0x445   : > { %v2218_v9 = vunpack.i.h.bf16 %v2216_v6  ;;  %v2217_v10 = vunpack.i.l.bf16 %v2216_v6 }
 0x447   : > { %v1406_v11 = vsel %vm1404_vm9, 0.0, %v2218_v9  ;;  %v1405_v12 = vsel %vm1404_vm9, 0.0, %v2217_v10 }
 0x448   : > { %v2226_v13 = vpop.permute.xlu1 %2225  ;;  %v1414_v14 = vsel %vm1413_vm10, %v1405_v12, %v2237_v8  ;;  %v1415_v15 = vsel %vm1413_vm10, %v1406_v11, %v2238_v7 }
 0x449   : > { %v1422_v16 = vpack.c.bf16 %v1414_v14, %v1414_v14  ;;  %v1423_v17 = vpack.c.bf16 %v1415_v15, %v1415_v15  ;;  %v2228_v45 = vunpack.i.h.bf16 %v2226_v13  ;;  %v2227_v46 = vunpack.i.l.bf16 %v2226_v13 }
 0x44b   : > { %1431 = vst.msk [vmem:[#allocation2] sm:$0xf] %vm1430_vm11, %v1422_v16  ;;  %v1410_v54 = vsel %vm1404_vm9, 0.0, %v2228_v45  ;;  %v1409_v55 = vsel %vm1404_vm9, 0.0, %v2227_v46 }
 0x44c   : > { %1432 = vst.msk [vmem:[#allocation2 + $0x4] sm:$0xf] %vm1430_vm11, %v1423_v17  ;;  %v2221_v18 = vpop.permute.xlu0 %2220 }
 0x44d   : > { %v2223_v21 = vunpack.i.h.bf16 %v2221_v18  ;;  %v2222_v22 = vunpack.i.l.bf16 %v2221_v18 }
 0x44f   : > { %v1408_v23 = vsel %vm1404_vm9, 0.0, %v2223_v21  ;;  %v1407_v24 = vsel %vm1404_vm9, 0.0, %v2222_v22 }
 0x450   : > { %v2231_v25 = vpop.permute.xlu1 %2230  ;;  %v1416_v31 = vsel %vm1413_vm10, %v1407_v24, %v2242_v20  ;;  %v1417_v42 = vsel %vm1413_vm10, %v1408_v23, %v2243_v19 }
 0x451   : > { %v1424_v43 = vpack.c.bf16 %v1416_v31, %v1416_v31  ;;  %v1425_v44 = vpack.c.bf16 %v1417_v42, %v1417_v42  ;;  %v2233_v50 = vunpack.i.h.bf16 %v2231_v25  ;;  %v2232_v51 = vunpack.i.l.bf16 %v2231_v25 }
 0x453   : > { %1433 = vst.msk [vmem:[#allocation2 + $0x8] sm:$0xf] %vm1430_vm11, %v1424_v43  ;;  %v1411_v63 = vsel %vm1404_vm9, %v1289_v57, %v2232_v51  ;;  %v1412_v0 = vsel %vm1404_vm9, %v1257_v56, %v2233_v50 }
 0x454   : > { %1434 = vst.msk [vmem:[#allocation2 + $0xc] sm:$0xf] %vm1430_vm11, %v1425_v44  ;;  %v2246_v49 = vpop.permute.xlu0 %2245 }
 0x455   : > { %v2248_v52 = vunpack.i.h.bf16 %v2246_v49  ;;  %v2247_v53 = vunpack.i.l.bf16 %v2246_v49 }
 0x457   : > { %v1418_v58 = vsel %vm1413_vm10, %v1409_v55, %v2247_v53  ;;  %v1419_v41 = vsel %vm1413_vm10, %v1410_v54, %v2248_v52 }
 0x458   : > { %v2251_v59 = vpop.permute.xlu1 %2250  ;;  %v1426_v40 = vpack.c.bf16 %v1418_v58, %v1418_v58  ;;  %v1427_v60 = vpack.c.bf16 %v1419_v41, %v1419_v41 }
 0x459   : > { %v2253_v61 = vunpack.i.h.bf16 %v2251_v59  ;;  %v2252_v62 = vunpack.i.l.bf16 %v2251_v59 }
 0x45a   : > { %1435 = vst.msk [vmem:[#allocation2 + $0x10] sm:$0xf] %vm1430_vm11, %v1426_v40 }
 0x45b   : > { %v1420_v1 = vsel %vm1413_vm10, %v1411_v63, %v2252_v62  ;;  %v1421_v37 = vsel %vm1413_vm10, %v1412_v0, %v2253_v61  ;;  %1436 = vst.msk [vmem:[#allocation2 + $0x14] sm:$0xf] %vm1430_vm11, %v1427_v60 }
 0x45c   : > { %v1428_v2 = vpack.c.bf16 %v1420_v1, %v1420_v1  ;;  %v1429_v3 = vpack.c.bf16 %v1421_v37, %v1421_v37 }
 0x45e   : > { %1437 = vst.msk [vmem:[#allocation2 + $0x18] sm:$0xf] %vm1430_vm11, %v1428_v2 }
 0x45f   : > { %1438 = vst.msk [vmem:[#allocation2 + $0x1c] sm:$0xf] %vm1430_vm11, %v1429_v3 }
 0x460 PF: > { %v2014_v39 = vld [vmem:[%s2459_s15 + $0x28] sm:$0xff]  ;;  %s2352_s26 = smov 32   ;;  %v2013_v4 = vld [vmem:[%s2459_s15 + $0x20] sm:$0xff]  ;;  %v2012_v5 = vld [vmem:[%s2459_s15 + $0x18] sm:$0xff]  ;;  %vm1519_vm14 = vcmask 785408   ;;  %s2353_s23 = smov 96  }
 0x461   : > { %1725 = vrot.lane.b32.xlu1 %v2522_v30, %s2352_s26  ;;  %1534 = vmatpush.bf16.msra.mxu0 %v2014_v39  ;;  %v2011_v6 = vld [vmem:[%s2459_s15 + $0x10] sm:$0xff]  ;;  %v2010_v7 = vld [vmem:[%s2459_s15 + $0x8] sm:$0xff]  ;;  %v2009_v8 = vld [vmem:[%s2459_s15] sm:$0xff]  ;;  %vm1801_vm5 = vcmask 261120  }
 0x462   : > { %2019 = vmatpush.bf16.msra.mxu1 %v2014_v39  ;;  %2020 = vmatpush.bf16.msra.mxu2 %v2014_v39  ;;  %v2005_v9 = vld [vmem:[#allocation2] sm:$0xff]  ;;  %v2006_v10 = vld [vmem:[#allocation2 + $0x8] sm:$0xff]  ;;  %v2007_v11 = vld [vmem:[#allocation2 + $0x10] sm:$0xff] }
 0x463   : > { %2021 = vmatpush.bf16.msra.mxu3 %v2014_v39  ;;  %1721 = vrot.lane.b32.xlu0 %v2516_v28, %s2352_s26  ;;  %v2254_v14 = vld [vmem:[%s384_s28] ss:$0 sm:$0xff] }
 0x464   : > { %1729 = vrot.lane.b32.xlu2 %v2531_v33, %s2352_s26 }
 0x465   : > { %1535 = vmatpush.bf16.msra.mxu0 %v2013_v4 }
 0x466   : > { %2022 = vmatpush.bf16.msra.mxu1 %v2013_v4  ;;  %2023 = vmatpush.bf16.msra.mxu2 %v2013_v4  ;;  %v2008_v12 = vld [vmem:[#allocation2 + $0x18] sm:$0xff] }
 0x467   : > { %2024 = vmatpush.bf16.msra.mxu3 %v2013_v4 }
 0x469   : > { %1727 = vrot.lane.b32.xlu1 %v2528_v32, %s2352_s26  ;;  %1536 = vmatpush.bf16.msra.mxu0 %v2012_v5 }
 0x46a   : > { %2025 = vmatpush.bf16.msra.mxu1 %v2012_v5  ;;  %2026 = vmatpush.bf16.msra.mxu2 %v2012_v5 }
 0x46b   : > { %2027 = vmatpush.bf16.msra.mxu3 %v2012_v5  ;;  %1723 = vrot.lane.b32.xlu0 %v2519_v29, %s2352_s26 }
 0x46c   : > { %1731 = vrot.lane.b32.xlu2 %v2534_v34, %s2352_s26 }
 0x46d   : > { %1537 = vmatpush.bf16.msra.mxu0 %v2011_v6 }
 0x46e   : > { %2028 = vmatpush.bf16.msra.mxu1 %v2011_v6  ;;  %2029 = vmatpush.bf16.msra.mxu2 %v2011_v6 }
 0x46f   : > { %2030 = vmatpush.bf16.msra.mxu3 %v2011_v6 }
 0x471   : > { %1735 = vrot.lane.b32.xlu1 %v2540_v36, %s2352_s26  ;;  %1538 = vmatpush.bf16.msra.mxu0 %v2010_v7 }
 0x472   : > { %2031 = vmatpush.bf16.msra.mxu1 %v2010_v7  ;;  %2032 = vmatpush.bf16.msra.mxu2 %v2010_v7 }
 0x473   : > { %2033 = vmatpush.bf16.msra.mxu3 %v2010_v7  ;;  %1733 = vrot.lane.b32.xlu0 %v2537_v35, %s2352_s26 }
 0x475   : > { %1539 = vmatpush.bf16.msra.mxu0 %v2009_v8 }
 0x476   : > { %2034 = vmatpush.bf16.msra.mxu1 %v2009_v8  ;;  %2035 = vmatpush.bf16.msra.mxu2 %v2009_v8 }
 0x477   : > { %2036 = vmatpush.bf16.msra.mxu3 %v2009_v8 }
 0x478   : > { %1986 = vmatmul.msk.bf16.vlgmr.msra.gmra.mxu0 %vm1519_vm14, %v2005_v9 }
 0x479   : > { %1987 = vmatmul.msk.bf16.vlgmr.msra.gmra.mxu1 %vm1519_vm14, %v2006_v10  ;;  %1988 = vmatmul.msk.bf16.vlgmr.msra.gmra.mxu2 %vm1519_vm14, %v2007_v11 }
 0x47a   : > { %1989 = vmatmul.msk.bf16.vlgmr.msra.gmra.mxu3 %vm1519_vm14, %v2008_v12 }
 0x4be   : > { %v1730_v21 = vpop.permute.xlu2 %1729 }
 0x4c6   : > { %v1732_v47 = vpop.permute.xlu2 %1731 }
 0x4d3   : > { %v1726_v15 = vpop.permute.xlu1 %1725 }
 0x4d5   : > { %v1722_v13 = vpop.permute.xlu0 %1721 }
 0x4db   : > { %v1728_v42 = vpop.permute.xlu1 %1727 }
 0x4dd   : > { %v1724_v22 = vpop.permute.xlu0 %1723 }
 0x4e3   : > { %v1736_v56 = vpop.permute.xlu1 %1735 }
 0x4e5   : > { %v1734_v49 = vpop.permute.xlu0 %1733 }
 0x4f5   : > { %v1541_v16 = vpop.f32.mrf.mxu0 }
 0x4f6   : > { %v1546_v17 = vpop.f32.mrf.mxu1  ;;  %v1542_v38 = vadd.f32 %v2254_v14, %v1541_v16 }
 0x4f7   : > { %v1547_v18 = vadd.f32 %v2254_v14, %v1546_v17 }
 0x4f8   : > { %v1745_v19 = vsub.f32 %v1542_v38, %v1722_v13  ;;  %v1990_v58 = vmul.f32 -1.442695, %v1542_v38 }
 0x4f9   : > { %v1747_v20 = vsub.f32 %v1547_v18, %v1726_v15  ;;  %v1992_v0 = vmul.f32 -1.442695, %v1547_v18 }
 0x4fa   : > { %1761 = vrot.lane.b32.xlu2 %v1745_v19, %s2353_s23  ;;  %2255 = vpow2.f32 %v1990_v58 }
 0x4fb   : > { %1765 = vrot.lane.b32.xlu1 %v1747_v20, %s2353_s23 }
 0x4fc   : > { %v1551_v23 = vpop.f32.mrf.mxu2 }
 0x4fd   : > { %v1552_v24 = vadd.f32 %v2254_v14, %v1551_v23  ;;  %v1556_v26 = vpop.f32.mrf.mxu3  ;;  %v1543_v43 = vpop.f32.mrf.mxu0 }
 0x4fe   : > { %v1548_v25 = vpop.f32.mrf.mxu1  ;;  %v1544_v45 = vadd.f32 %v2254_v14, %v1543_v43  ;;  %v1557_v50 = vadd.f32 %v2254_v14, %v1556_v26 }
 0x4ff   : > { %v1549_v27 = vadd.f32 %v2254_v14, %v1548_v25  ;;  %v1749_v31 = vsub.f32 %v1552_v24, %v1730_v21  ;;  %v1994_v4 = vmul.f32 -1.442695, %v1552_v24 }
 0x500   : > { %v1746_v51 = vsub.f32 %v1544_v45, %v1724_v22  ;;  %v1751_v54 = vsub.f32 %v1557_v50, %v1734_v49  ;;  %v2256_v59 = vpop.eup %2255  ;;  %v1996_v60 = vmul.f32 -1.442695, %v1557_v50  ;;  %v1991_v9 = vmul.f32 -1.442695, %v1544_v45 }
 0x501   : > { %v1748_v44 = vsub.f32 %v1549_v27, %v1728_v42  ;;  %1769 = vrot.lane.b32.xlu0 %v1749_v31, %s2353_s23  ;;  %v1993_v41 = vmul.f32 -1.442695, %v1549_v27  ;;  %v1585_v40 = vadd.f32 1.0, %v2256_v59 }
 0x503   : > { %1767 = vrot.lane.b32.xlu2 %v1748_v44, %s2353_s23  ;;  %2257 = vpow2.f32 %v1993_v41  ;;  %vm1598_vm15 = vweird.f32 %v1585_v40  ;;  %v1602_v15 = vand.u32 2147483647, %v1585_v40 }
 0x504   : > { %v1553_v46 = vpop.f32.mrf.mxu2  ;;  %2259 = vrcp.f32 %v1585_v40 }
 0x505   : > { %v1554_v48 = vadd.f32 %v2254_v14, %v1553_v46  ;;  %v1558_v53 = vpop.f32.mrf.mxu3  ;;  %2261 = vpow2.f32 %v1996_v60  ;;  %vm1603_vm2 = vcmp.eq.f32.partialorder %v1602_v15, 8.507059e+37 }
 0x506   : > { %v1559_v55 = vadd.f32 %v2254_v14, %v1558_v53  ;;  %v1604_v14 = vand.u32 2147483648, %v1585_v40 }
 0x507   : > { %v1750_v52 = vsub.f32 %v1554_v48, %v1732_v47  ;;  %v1995_v13 = vmul.f32 -1.442695, %v1554_v48 }
 0x508   : > { %v1752_v57 = vsub.f32 %v1559_v55, %v1736_v56  ;;  %v1605_v19 = vor.u32 1.1754944e-38, %v1604_v14  ;;  %v1997_v27 = vmul.f32 -1.442695, %v1559_v55 }
 0x509   : > { %1771 = vrot.lane.b32.xlu1 %v1750_v52, %s2353_s23  ;;  %1763 = vrot.lane.b32.xlu0 %v1746_v51, %s2353_s23  ;;  %v2258_v61 = vpop.eup %2257 }
 0x50a   : > { %v1588_v62 = vadd.f32 1.0, %v2258_v61  ;;  %v2260_v63 = vpop.eup %2259 }
 0x50b   : > { %1773 = vrot.lane.b32.xlu2 %v1751_v54, %s2353_s23  ;;  %v2262_v1 = vpop.eup %2261  ;;  %v1594_v37 = vmul.f32 %v2260_v63, %v1585_v40  ;;  %vm1599_vm0 = vweird.f32 %v2260_v63 }
 0x50c   : > { %2263 = vrcp.f32 %v1588_v62  ;;  %v2903_v2 = vadd.f32 1.0, %v2262_v1  ;;  %vm1600_vm1 = vmor %vm1598_vm15, %vm1599_vm0  ;;  %vm1643_vm3 = vweird.f32 %v1588_v62  ;;  %v1649_v31 = vand.u32 2147483648, %v1588_v62 }
 0x50d   : > { %2265 = vpow2.f32 %v1992_v0  ;;  %v1595_v3 = vsub.f32 1.0, %v1594_v37  ;;  %v1647_v44 = vand.u32 2147483647, %v1588_v62 }
 0x50e   : > { %2267 = vrcp.f32 %v2903_v2  ;;  %v1650_v50 = vor.u32 1.1754944e-38, %v1649_v31  ;;  %vm1688_vm8 = vweird.f32 %v2903_v2  ;;  %v1692_v41 = vand.u32 2147483647, %v2903_v2 }
 0x50f   : > { %v1596_v6 = vmul.f32 %v2260_v63, %v1595_v3  ;;  %2269 = vpow2.f32 %v1994_v4  ;;  %vm1648_vm7 = vcmp.eq.f32.partialorder %v1647_v44, 8.507059e+37 }
 0x510   : > { %vm1693_vm11 = vcmp.eq.f32.partialorder %v1692_v41, 8.507059e+37 }
 0x511   : > { %1775 = vrot.lane.b32.xlu0 %v1752_v57, %s2353_s23  ;;  %v1597_v10 = vadd.f32 %v2260_v63, %v1596_v6  ;;  %v1694_v57 = vand.u32 2147483648, %v2903_v2 }
 0x512   : > { %v2264_v39 = vpop.eup %2263 }
 0x513   : > { %v2266_v5 = vpop.eup %2265  ;;  %v1639_v7 = vmul.f32 %v2264_v39, %v1588_v62  ;;  %v1601_v17 = vsel %vm1600_vm1, %v2260_v63, %v1597_v10  ;;  %vm1644_vm4 = vweird.f32 %v2264_v39  ;;  %v1695_v62 = vor.u32 1.1754944e-38, %v1694_v57 }
 0x514   : > { %v2906_v8 = vadd.f32 1.0, %v2266_v5  ;;  %v2908_v12 = vpop.eup %2267  ;;  %v1606_v22 = vsel %vm1603_vm2, %v1605_v19, %v1601_v17  ;;  %vm1645_vm6 = vmor %vm1643_vm3, %vm1644_vm4 }
 0x515   : > { %v1640_v11 = vsub.f32 1.0, %v1639_v7  ;;  %v2270_v16 = vpop.eup %2269  ;;  %v1684_v18 = vmul.f32 %v2908_v12, %v2903_v2  ;;  %vm1689_vm9 = vweird.f32 %v2908_v12 }
 0x516   : > { %2271 = vrcp.f32 %v2906_v8  ;;  %v2913_v20 = vadd.f32 1.0, %v2270_v16  ;;  %vm1690_vm10 = vmor %vm1688_vm8, %vm1689_vm9  ;;  %vm1628_vm12 = vweird.f32 %v2906_v8  ;;  %v1634_v37 = vand.u32 2147483648, %v2906_v8 }
 0x517   : > { %2273 = vpow2.f32 %v1991_v9  ;;  %v1641_v38 = vmul.f32 %v2264_v39, %v1640_v11  ;;  %v1685_v25 = vsub.f32 1.0, %v1684_v18  ;;  %v1632_v5 = vand.u32 2147483647, %v2906_v8 }
 0x518   : > { %2275 = vpow2.f32 %v1995_v13  ;;  %v1635_v7 = vor.u32 1.1754944e-38, %v1634_v37  ;;  %vm1658_vm1 = vweird.f32 %v2913_v20  ;;  %v1662_v18 = vand.u32 2147483647, %v2913_v20 }
 0x519   : > { %v1642_v24 = vadd.f32 %v2264_v39, %v1641_v38  ;;  %2277 = vrcp.f32 %v2913_v20  ;;  %v1686_v47 = vmul.f32 %v2908_v12, %v1685_v25  ;;  %vm1633_vm15 = vcmp.eq.f32.partialorder %v1632_v5, 8.507059e+37 }
 0x51a   : > { %2279 = vpow2.f32 %v1997_v27  ;;  %v1664_v38 = vand.u32 2147483648, %v2913_v20  ;;  %vm1663_vm3 = vcmp.eq.f32.partialorder %v1662_v18, 8.507059e+37 }
 0x51b   : > { %v1646_v46 = vsel %vm1645_vm6, %v2264_v39, %v1642_v24  ;;  %v1687_v55 = vadd.f32 %v2908_v12, %v1686_v47 }
 0x51c   : > { %v2915_v26 = vpop.eup %2271  ;;  %v1651_v52 = vsel %vm1648_vm7, %v1650_v50, %v1646_v46  ;;  %v1665_v25 = vor.u32 1.1754944e-38, %v1664_v38 }
 0x51d   : > { %v2274_v42 = vpop.eup %2273  ;;  %v1624_v48 = vmul.f32 %v2915_v26, %v2906_v8  ;;  %v1691_v60 = vsel %vm1690_vm10, %v2908_v12, %v1687_v55  ;;  %vm1629_vm13 = vweird.f32 %v2915_v26 }
 0x51e   : > { %v2276_v45 = vpop.eup %2275  ;;  %v2924_v49 = vadd.f32 1.0, %v2274_v42  ;;  %v1696_v0 = vsel %vm1693_vm11, %v1695_v62, %v1691_v60  ;;  %vm1630_vm14 = vmor %vm1628_vm12, %vm1629_vm13 }
 0x51f   : > { %v2926_v51 = vadd.f32 1.0, %v2276_v45  ;;  %v2929_v53 = vpop.eup %2277  ;;  %v1625_v56 = vsub.f32 1.0, %v1624_v48 }
 0x520   : > { %2281 = vrcp.f32 %v2924_v49  ;;  %v2280_v59 = vpop.eup %2279  ;;  %v1654_v40 = vmul.f32 %v2929_v53, %v2913_v20  ;;  %vm1659_vm0 = vweird.f32 %v2929_v53  ;;  %v1619_v44 = vand.u32 2147483648, %v2924_v49 }
 0x521   : > { %2283 = vrcp.f32 %v2926_v51  ;;  %v1626_v61 = vmul.f32 %v2915_v26, %v1625_v56  ;;  %v2944_v63 = vadd.f32 1.0, %v2280_v59  ;;  %vm1660_vm2 = vmor %vm1658_vm1, %vm1659_vm0  ;;  %vm1673_vm7 = vweird.f32 %v2926_v51 }
 0x522   : > { %v1655_v2 = vsub.f32 1.0, %v1654_v40  ;;  %v1677_v46 = vand.u32 2147483647, %v2926_v51  ;;  %vm1613_vm9 = vweird.f32 %v2924_v49  ;;  %v1617_v47 = vand.u32 2147483647, %v2924_v49 }
 0x523   : > { %v1627_v4 = vadd.f32 %v2915_v26, %v1626_v61  ;;  %2285 = vrcp.f32 %v2944_v63  ;;  %v1707_v40 = vand.u32 2147483647, %v2944_v63 }
 0x524   : > { %v1656_v9 = vmul.f32 %v2929_v53, %v1655_v2  ;;  %vm1678_vm11 = vcmp.eq.f32.partialorder %v1677_v46, 8.507059e+37  ;;  %vm1618_vm12 = vcmp.eq.f32.partialorder %v1617_v47, 8.507059e+37 }
 0x525   : > { %v1631_v12 = vsel %vm1630_vm14, %v2915_v26, %v1627_v4  ;;  %vm1703_vm14 = vweird.f32 %v2944_v63  ;;  %vm1708_vm0 = vcmp.eq.f32.partialorder %v1707_v40, 8.507059e+37 }
 0x526   : > { %v1636_v13 = vsel %vm1633_vm15, %v1635_v7, %v1631_v12 }
 0x554   : > { %v1762_v21 = vpop.permute.xlu2 %1761 }
 0x555   : > { %v1785_v23 = vmul.f32 %v1762_v21, %v1606_v22 }
 0x557   : > { %v1793_v43 = vadd.f32 %v1785_v23, %v2516_v28 }
 0x559   : > { %1802 = vst.msk [vmem:[%s2464_s22] sm:$0xff] %vm1801_vm5, %v1793_v43  ;;  %v1679_v43 = vand.u32 2147483648, %v2926_v51 }
 0x55d   : > { %v1768_v28 = vpop.permute.xlu2 %1767 }
 0x55e   : > { %v1788_v54 = vmul.f32 %v1768_v28, %v1651_v52  ;;  %v1680_v28 = vor.u32 1.1754944e-38, %v1679_v43 }
 0x560   : > { %v1796_v58 = vadd.f32 %v1788_v54, %v2528_v32  ;;  %v2948_v32 = vpop.eup %2281 }
 0x561   : > { %v2284_v3 = vpop.eup %2283  ;;  %v1609_v11 = vmul.f32 %v2948_v32, %v2924_v49  ;;  %vm1614_vm6 = vweird.f32 %v2948_v32 }
 0x562   : > { %1805 = vst.msk [vmem:[%s2464_s22 + $0x18] sm:$0xff] %vm1801_vm5, %v1796_v58  ;;  %v1669_v10 = vmul.f32 %v2284_v3, %v2926_v51  ;;  %v2286_v16 = vpop.eup %2285  ;;  %vm1674_vm4 = vweird.f32 %v2284_v3  ;;  %vm1615_vm10 = vmor %vm1613_vm9, %vm1614_vm6  ;;  %v1709_v58 = vand.u32 2147483648, %v2944_v63 }
 0x563   : > { %v1610_v15 = vsub.f32 1.0, %v1609_v11  ;;  %v1699_v24 = vmul.f32 %v2286_v16, %v2944_v63  ;;  %vm1675_vm8 = vmor %vm1673_vm7, %vm1674_vm4  ;;  %vm1704_vm13 = vweird.f32 %v2286_v16 }
 0x564   : > { %v1670_v14 = vsub.f32 1.0, %v1669_v10  ;;  %vm1705_vm15 = vmor %vm1703_vm14, %vm1704_vm13  ;;  %v1710_v61 = vor.u32 1.1754944e-38, %v1709_v58 }
 0x565   : > { %v1774_v1 = vpop.permute.xlu2 %1773  ;;  %v1611_v23 = vmul.f32 %v2948_v32, %v1610_v15  ;;  %v1700_v42 = vsub.f32 1.0, %v1699_v24 }
 0x566   : > { %v1791_v39 = vmul.f32 %v1774_v1, %v1696_v0  ;;  %v1671_v22 = vmul.f32 %v2284_v3, %v1670_v14 }
 0x567   : > { %v1612_v31 = vadd.f32 %v2948_v32, %v1611_v23  ;;  %v1701_v52 = vmul.f32 %v2286_v16, %v1700_v42 }
 0x568   : > { %v1799_v6 = vadd.f32 %v1791_v39, %v2537_v35  ;;  %v1657_v35 = vadd.f32 %v2929_v53, %v1656_v9 }
 0x569   : > { %v1616_v50 = vsel %vm1615_vm10, %v2948_v32, %v1612_v31  ;;  %v1702_v49 = vadd.f32 %v2286_v16, %v1701_v52 }
 0x56a   : > { %1808 = vst.msk [vmem:[%s2464_s22 + $0x30] sm:$0xff] %vm1801_vm5, %v1799_v6  ;;  %v1661_v21 = vsel %vm1660_vm2, %v2929_v53, %v1657_v35  ;;  %v1620_v53 = vor.u32 1.1754944e-38, %v1619_v44 }
 0x56b   : > { %v1666_v27 = vsel %vm1663_vm3, %v1665_v25, %v1661_v21  ;;  %v1706_v60 = vsel %vm1705_vm15, %v2286_v16, %v1702_v49 }
 0x56c   : > { %v1621_v55 = vsel %vm1618_vm12, %v1620_v53, %v1616_v50  ;;  %v1711_v62 = vsel %vm1708_vm0, %v1710_v61, %v1706_v60 }
 0x56d   : > { %v1766_v8 = vpop.permute.xlu1 %1765 }
 0x56e   : > { %v1787_v17 = vmul.f32 %v1766_v8, %v1636_v13 }
 0x570   : > { %v1795_v19 = vadd.f32 %v1787_v17, %v2522_v30  ;;  %v1672_v30 = vadd.f32 %v2284_v3, %v1671_v22 }
 0x572   : > { %1804 = vst.msk [vmem:[%s2464_s22 + $0x10] sm:$0xff] %vm1801_vm5, %v1795_v19  ;;  %v1676_v48 = vsel %vm1675_vm8, %v2284_v3, %v1672_v30 }
 0x573   : > { %v1770_v26 = vpop.permute.xlu0 %1769 }
 0x574   : > { %v1789_v20 = vmul.f32 %v1770_v26, %v1666_v27 }
 0x576   : > { %v1797_v45 = vadd.f32 %v1789_v20, %v2531_v33  ;;  %v1681_v33 = vsel %vm1678_vm11, %v1680_v28, %v1676_v48 }
 0x578   : > { %1806 = vst.msk [vmem:[%s2464_s22 + $0x20] sm:$0xff] %vm1801_vm5, %v1797_v45 }
 0x57b   : > { %v1772_v54 = vpop.permute.xlu1 %1771  ;;  %v1764_v51 = vpop.permute.xlu0 %1763 }
 0x57c   : > { %v1790_v56 = vmul.f32 %v1772_v54, %v1681_v33  ;;  %v1786_v57 = vmul.f32 %v1764_v51, %v1621_v55 }
 0x57e   : > { %v1798_v41 = vadd.f32 %v1790_v56, %v2534_v34  ;;  %v1794_v59 = vadd.f32 %v1786_v57, %v2519_v29 }
 0x580   : > { %1807 = vst.msk [vmem:[%s2464_s22 + $0x28] sm:$0xff] %vm1801_vm5, %v1798_v41 }
 0x581   : > { %1803 = vst.msk [vmem:[%s2464_s22 + $0x8] sm:$0xff] %vm1801_vm5, %v1794_v59 }
 0x583   : > { %v1776_v32 = vpop.permute.xlu0 %1775 }
 0x584   : > { %v1792_v0 = vmul.f32 %v1776_v32, %v1711_v62 }
 0x586   : > { %v1800_v1 = vadd.f32 %v1792_v0, %v2540_v36 }
 0x588   : > { %1809 = vst.msk [vmem:[%s2464_s22 + $0x38] sm:$0xff] %vm1801_vm5, %v1800_v1 }
 0x589 PF: > { %s28_s21 = sadd.s32 1, %s2339_s21   ;;  %s3024_s24 = sld [smem:[#allocation6_spill]] }
 0x58a   : > { %p25_p12 = scmp.ge.s32.totalorder %s28_s21, 22   ;;  %s3025_s17 = smov %s2331_s19 }
 0x58b   : > { %s3026_s18 = smov %s2335_s20  ;;  %s3027_s19 = smov %s3030_s0 }
 0x58c   :  { %27 = sbr.rel (!%p25_p12) target bundleno = 9 (0x9), region = 112 }
 0x58f   : > { %s3028_s20 = smov %s3024_s24 }

</bundles_post_ra>
